<compile_context>
chip_gen: v7x
topology: tpu7x:2x2x1
jax: 0.10.0
libtpu: 0.0.40
codegen_flags: <defaults>
</compile_context>

<pallas_src>
import math

import jax
import jax.numpy as jnp
from jax import lax
from jax.experimental import pallas as pl
from jax.experimental.pallas import tpu as pltpu


# ----------------------------- sizing helpers ------------------------------

def _vmem_capacity_bytes(default=64 << 20):
    """Physical VMEM of the current chip; conservative default if the query fails."""
    try:
        return int(pltpu.get_tpu_info().vmem_capacity_bytes)
    except Exception:
        return default


def _pick_lane_tile(M, per_lane_bytes_2buf, budget_bytes, cap_lanes=32768):
    """Largest lane tile (multiple of 128 dividing M, <= cap) whose double-buffered
    footprint fits the budget; full extent for small / odd M."""
    if M % 128 != 0:
        return M
    by_budget = max(128, (budget_bytes // max(per_lane_bytes_2buf, 1)) // 128 * 128)
    t = min(M, cap_lanes, by_budget)
    t = max(128, (t // 128) * 128)
    while t > 128 and M % t != 0:
        t -= 128
    return t


# ----------------------------- Pallas kernels ------------------------------

def _make_fused_kernel(C, img_c, tn, inv_count, eps):
    """Fused conv-transpose matmul + BN-stats + scale/shift+ReLU + logits extraction.

    Grid = (2, num_lane_tiles):
      phase 0: y_tile = W @ xt_tile + bias (bf16 MXU, f32 acc) -> VMEM scratch,
               accumulate per-row sum / sumsq.
      phase 1: finalize BN scale/shift once, then stream y from VMEM scratch to the
               normalized/ReLU'd output and the pre-BN logits slab (lane-dense stores).
    """
    def kernel(xt_ref, wt_ref, b_ref, g_ref, bt_ref,        # inputs
               out_ref, lg_ref,                              # outputs
               yt_ref, psum_ref, psq_ref, sc_ref, sh_ref):   # scratch
        p = pl.program_id(0)          # phase
        i = pl.program_id(1)          # lane tile
        start = i * tn
        if tn % 128 == 0:
            start = pl.multiple_of(start, 128)
        lanes = pl.ds(start, tn)

        @pl.when(jnp.logical_and(p == 0, i == 0))
        def _init():
            psum_ref[...] = jnp.zeros_like(psum_ref)
            psq_ref[...] = jnp.zeros_like(psq_ref)

        @pl.when(p == 0)
        def _matmul_and_stats():
            y = jnp.dot(wt_ref[...], xt_ref[...],
                        preferred_element_type=jnp.float32)      # MXU, bf16 inputs
            y = y + b_ref[...]
            yt_ref[:, lanes] = y                                  # stays on-chip
            psum_ref[...] += jnp.sum(y, axis=1, keepdims=True)
            psq_ref[...] += jnp.sum(y * y, axis=1, keepdims=True)

        @pl.when(p == 1)
        def _normalize_and_store():
            @pl.when(i == 0)
            def _finalize_stats():
                cs = (psum_ref[0:C] + psum_ref[C:2 * C]
                      + psum_ref[2 * C:3 * C] + psum_ref[3 * C:4 * C])
                cq = (psq_ref[0:C] + psq_ref[C:2 * C]
                      + psq_ref[2 * C:3 * C] + psq_ref[3 * C:4 * C])
                mean = cs * inv_count
                var = jnp.maximum(cq * inv_count - mean * mean, 0.0)
                sc = g_ref[...] * lax.rsqrt(var + eps)
                sc_ref[...] = sc
                sh_ref[...] = bt_ref[...] - mean * sc

            for pp in range(4):                     # one slab per 2x2 output parity
                rows = yt_ref[pp * C:(pp + 1) * C, lanes]         # (C, tn), pre-BN
                lg_ref[pp, :, :] = rows[0:img_c, :]               # logits channels
                out_ref[pp * C:(pp + 1) * C, :] = jnp.maximum(
                    rows * sc_ref[...] + sh_ref[...], 0.0)
    return kernel


def _make_bicubic_kernel(img_c, imsize, H, W):
    def kernel(yl_ref, whp_ref, wwtp_ref, o_ref):
        # yl_ref:  (4, img_c, 1, H, W)  pre-BN logits planes, parity p = 2*ph + pw
        # whp_ref: (2, imsize, H)       height-interp weights per output-row parity
        # wwtp_ref:(2, W, imsize)       width-interp weights per output-col parity (T)
        # o_ref:   (1, img_c, imsize, imsize)   lane-dense when imsize >= 128
        for c in range(img_c):
            acc = jnp.zeros((imsize, imsize), jnp.float32)
            for pw in range(2):
                t = jnp.zeros((imsize, W), jnp.float32)
                for ph in range(2):
                    plane = yl_ref[2 * ph + pw, c, 0]                     # (H, W)
                    t = t + jnp.dot(whp_ref[ph], plane,
                                    preferred_element_type=jnp.float32)   # (imsize, W)
                acc = acc + jnp.dot(t, wwtp_ref[pw],
                                    preferred_element_type=jnp.float32)   # (imsize, imsize)
            o_ref[0, c] = acc
    return kernel


# ----------------------------- glue helpers --------------------------------

def bicubic_weights(in_size, out_size):
    """Row-interpolation matrix matching torch.nn.Upsample(mode='bicubic',
    align_corners=False): W[o, i] such that out = W @ in (per axis)."""
    A = -0.75
    scale = in_size / out_size
    o = jnp.arange(out_size, dtype=jnp.float32)
    src = (o + 0.5) * scale - 0.5
    ix = jnp.floor(src)
    t = src - ix

    def cub1(x):
        return ((A + 2.0) * x - (A + 3.0)) * x * x + 1.0

    def cub2(x):
        return ((A * x - 5.0 * A) * x + 8.0 * A) * x - 4.0 * A

    coeffs = jnp.stack([cub2(t + 1.0), cub1(t), cub1(1.0 - t), cub2(2.0 - t)], axis=1)
    idx = ix[:, None].astype(jnp.int32) + jnp.arange(-1, 3, dtype=jnp.int32)[None, :]
    idx = jnp.clip(idx, 0, in_size - 1)                       # border clamping
    onehot = jax.nn.one_hot(idx, in_size, dtype=jnp.float32)  # (out, 4, in)
    return jnp.sum(coeffs[:, :, None] * onehot, axis=1)       # (out, in)


# ----------------------------- DrawLayer ------------------------------------

class DrawLayerPallas:
    def __init__(self, in_c, out_c, img_c, imsize, key):
        self.in_c, self.out_c, self.img_c, self.imsize = in_c, out_c, img_c, imsize
        k1, k2, k3, k4 = jax.random.split(key, 4)
        # PyTorch ConvTranspose2d default init: kaiming-uniform with fan_in = out_c*k*k
        bound = 1.0 / math.sqrt(out_c * 9)
        self.weight = jax.random.uniform(k1, (in_c, out_c, 3, 3), jnp.float32, -bound, bound)
        self.bias = jax.random.uniform(k2, (out_c,), jnp.float32, -bound, bound)
        # BatchNorm2d affine params (deterministic, non-trivial)
        self.gamma = 1.0 + 0.1 * jax.random.normal(k3, (out_c,), jnp.float32)
        self.beta = 0.1 * jax.random.normal(k4, (out_c,), jnp.float32)
        self.eps = 1e-5

        # Effective conv-transpose weight matrix:
        #   y[n, c, 2m+ph, 2j+pw] = bias[c]
        #     + sum_{dh,dw,ic} x[n, ic, m+dh, j+dw] * w[ic, c, ph+1-2dh, pw+1-2dw]
        # Rows ordered parity-major (p = 2*ph+pw, then c); cols (2*dh+dw, ic). bf16.
        C, Cin = out_c, in_c
        w_eff = jnp.zeros((2, 2, C, 2, 2, Cin), jnp.float32)   # (ph, pw, c, dh, dw, ic)
        for dh in (0, 1):
            for dw in (0, 1):
                for ph in (0, 1):
                    for pw in (0, 1):
                        kh = ph + 1 - 2 * dh
                        kw = pw + 1 - 2 * dw
                        if 0 <= kh <= 2 and 0 <= kw <= 2:
                            w_eff = w_eff.at[ph, pw, :, dh, dw, :].set(
                                self.weight[:, :, kh, kw].T)
        self.w_t = w_eff.reshape(4 * C, 4 * Cin).astype(jnp.bfloat16)
        self.b_rows = jnp.tile(self.bias, 4).reshape(4 * C, 1)
        self.g_col = self.gamma.reshape(C, 1)
        self.bt_col = self.beta.reshape(C, 1)

        self._vmem_cap = _vmem_capacity_bytes()
        self._fwd = jax.jit(self._forward)

    def __call__(self, inp):
        x, layers = inp
        out, upsampled_logits = self._fwd(x)
        layers.append(upsampled_logits)
        return out, layers

    def _forward(self, x_nchw):
        N, Cin, H, W = x_nchw.shape
        C, img_c, imsize, eps = self.out_c, self.img_c, self.imsize, self.eps
        Ho, Wo = 2 * H, 2 * W
        M = N * H * W                        # flattened spatial lanes (per parity)

        # ---- parity im2col of the (small) input, cast to bf16 for the MXU ----
        xp = jnp.pad(x_nchw, ((0, 0), (0, 0), (0, 1), (0, 1)))
        pats = [xp[:, :, dh:dh + H, dw:dw + W] for dh in (0, 1) for dw in (0, 1)]
        xt = (jnp.stack(pats, axis=0).transpose(0, 2, 1, 3, 4)
              .reshape(4 * Cin, M).astype(jnp.bfloat16))

        # ---- VMEM budget / lane tile (chip-derived; v7x has only 64 MiB VMEM) ----
        vmem_limit = min(int(0.70 * self._vmem_cap), 96 << 20)
        yt_bytes = 4 * C * M * 4
        fixed_bytes = (4 << 20) + 2 * (4 * C * 4 * Cin * 2) + (64 << 10)
        per_lane_2buf = 2 * (4 * Cin * 2 + 4 * C * 4 + 4 * img_c * 4)
        budget = vmem_limit - yt_bytes - fixed_bytes
        if budget < per_lane_2buf * 128:
            # TODO(synk): streaming fallback (re-read y from HBM in the normalize
            # pass) for problem sizes where y does not fit in VMEM.
            raise NotImplementedError("conv-transpose output does not fit in VMEM")
        tn = _pick_lane_tile(M, per_lane_2buf, budget)
        nt = M // tn

        # ---- fused kernel: matmul+bias, BN stats, scale/shift+ReLU, logits slab ----
        out_t, logits_t = pl.pallas_call(
            _make_fused_kernel(C, img_c, tn, 1.0 / float(N * Ho * Wo), eps),
            out_shape=(jax.ShapeDtypeStruct((4 * C, M), jnp.float32),
                       jax.ShapeDtypeStruct((4, img_c, M), jnp.float32)),
            grid=(2, nt),
            in_specs=[
                pl.BlockSpec((4 * Cin, tn), lambda p, i: (0, i * (1 - p))),  # xt (bf16)
                pl.BlockSpec((4 * C, 4 * Cin), lambda p, i: (0, 0)),         # weights
                pl.BlockSpec((4 * C, 1), lambda p, i: (0, 0)),               # bias rows
                pl.BlockSpec((C, 1), lambda p, i: (0, 0)),                   # gamma
                pl.BlockSpec((C, 1), lambda p, i: (0, 0)),                   # beta
            ],
            out_specs=(
                pl.BlockSpec((4 * C, tn), lambda p, i: (0, i * p)),
                pl.BlockSpec((4, img_c, tn), lambda p, i: (0, 0, i * p)),
            ),
            scratch_shapes=[
                pltpu.VMEM((4 * C, M), jnp.float32),   # y resident across the grid
                pltpu.VMEM((4 * C, 1), jnp.float32),   # per-row sum
                pltpu.VMEM((4 * C, 1), jnp.float32),   # per-row sum of squares
                pltpu.VMEM((C, 1), jnp.float32),       # BN scale
                pltpu.VMEM((C, 1), jnp.float32),       # BN shift
            ],
            compiler_params=pltpu.CompilerParams(
                # Global BN stats + HBM-bound fused kernel -> sequential grid.
                dimension_semantics=("arbitrary", "arbitrary"),
                vmem_limit_bytes=vmem_limit),
        )(xt, self.w_t, self.b_rows, self.g_col, self.bt_col)

        # ---- bicubic resample of the pre-BN logits channels (parity layout in) ----
        wh = bicubic_weights(Ho, imsize)                           # (imsize, Ho)
        ww = bicubic_weights(Wo, imsize)                           # (imsize, Wo)
        whp = jnp.stack([wh[:, 0::2], wh[:, 1::2]], axis=0)        # (2, imsize, H)
        wwtp = jnp.stack([ww[:, 0::2].T, ww[:, 1::2].T], axis=0)   # (2, W, imsize)
        yl = logits_t.reshape(4, img_c, N, H, W)                   # free trailing split
        upsampled_logits = pl.pallas_call(
            _make_bicubic_kernel(img_c, imsize, H, W),
            out_shape=jax.ShapeDtypeStruct((N, img_c, imsize, imsize), jnp.float32),
            grid=(N,),
            in_specs=[
                pl.BlockSpec((4, img_c, 1, H, W), lambda n: (0, 0, n, 0, 0)),
                pl.BlockSpec((2, imsize, H), lambda n: (0, 0, 0)),
                pl.BlockSpec((2, W, imsize), lambda n: (0, 0, 0)),
            ],
            out_specs=pl.BlockSpec((1, img_c, imsize, imsize), lambda n: (n, 0, 0, 0)),
            compiler_params=pltpu.CompilerParams(dimension_semantics=("parallel",)),
        )(yl, whp, wwtp)

        # ---- single remaining XLA relayout: (ph, pw, c, n, h, w) -> NCHW ----
        out6 = out_t.reshape(2, 2, C, N, H, W)
        out = jnp.transpose(out6, (3, 2, 4, 0, 5, 1)).reshape(N, C, Ho, Wo)
        # TODO(synk): BatchNorm running-stat updates (momentum side effect) not modeled.
        return out, upsampled_logits


# --------------------------------- main --------------------------------------

if __name__ == "__main__":
    key = jax.random.PRNGKey(0)
    kx, kp = jax.random.split(key)

    N, in_c, out_c, img_c, imsize = 2, 4, 8, 3, 128
    H = W = 16            # conv-transpose output is 32x32, bicubic-resampled to 128x128

    x = jax.random.normal(kx, (N, in_c, H, W), dtype=jnp.float32)
    layer = DrawLayerPallas(in_c, out_c, img_c, imsize, kp)

    out, layers = layer((x, []))
    out = jax.block_until_ready(out)
    up = jax.block_until_ready(layers[-1])

    assert out.shape == (N, out_c, 2 * H, 2 * W)
    assert up.shape == (N, img_c, imsize, imsize)
    assert bool(jnp.all(jnp.isfinite(out))) and bool(jnp.all(jnp.isfinite(up)))
    assert bool(jnp.all(out >= 0.0))          # ReLU output

    print("KERNEL_OK")
</pallas_src>

<mosaic_0001>
module attributes {stable_mosaic.version = 11 : i64} {
  func.func @kernel(%arg0: i32, %arg1: i32, %arg2: memref<16x512xbf16, #tpu.memory_space<vmem>>, %arg3: memref<32x16xbf16, #tpu.memory_space<vmem>>, %arg4: memref<32x1xf32, #tpu.memory_space<vmem>>, %arg5: memref<8x1xf32, #tpu.memory_space<vmem>>, %arg6: memref<8x1xf32, #tpu.memory_space<vmem>>, %arg7: memref<32x512xf32, #tpu.memory_space<vmem>>, %arg8: memref<4x3x512xf32, #tpu.memory_space<vmem>>, %arg9: memref<32x512xf32, #tpu.memory_space<vmem>>, %arg10: memref<32x1xf32, #tpu.memory_space<vmem>>, %arg11: memref<32x1xf32, #tpu.memory_space<vmem>>, %arg12: memref<8x1xf32, #tpu.memory_space<vmem>>, %arg13: memref<8x1xf32, #tpu.memory_space<vmem>>) attributes {dimension_semantics = [#tpu.dimension_semantics<arbitrary>, #tpu.dimension_semantics<arbitrary>], iteration_bounds = array<i64: 2, 1>, scalar_prefetch = 0 : i64, scratch_operands = 5 : i64, tpu.core_type = #tpu.core_type<tc>, window_params = [{transform_indices = @transform_0, window_bounds = array<i64: 16, 512>}, {pipeline_mode = #tpu.pipeline_mode<synchronous>, transform_indices = @transform_1, window_bounds = array<i64: 32, 16>}, {pipeline_mode = #tpu.pipeline_mode<synchronous>, transform_indices = @transform_2, window_bounds = array<i64: 32, 1>}, {pipeline_mode = #tpu.pipeline_mode<synchronous>, transform_indices = @transform_3, window_bounds = array<i64: 8, 1>}, {pipeline_mode = #tpu.pipeline_mode<synchronous>, transform_indices = @transform_4, window_bounds = array<i64: 8, 1>}, {transform_indices = @transform_5, window_bounds = array<i64: 32, 512>}, {transform_indices = @transform_6, window_bounds = array<i64: 4, 3, 512>}]} {
    %c512_i32 = arith.constant 512 : i32
    %0 = arith.muli %arg1, %c512_i32 : i32
    %1 = tpu.assume_multiple %0, 128 : i32
    %c0_i32 = arith.constant 0 : i32
    %2 = arith.cmpi eq, %arg0, %c0_i32 : i32
    %c0_i32_0 = arith.constant 0 : i32
    %3 = arith.cmpi eq, %arg1, %c0_i32_0 : i32
    %4 = arith.andi %2, %3 : i1
    %5 = arith.extui %4 : i1 to i32
    %c0_i32_1 = arith.constant 0 : i32
    %6 = arith.cmpi ne, %5, %c0_i32_1 : i32
    scf.if %6 {
      %cst = arith.constant 0.000000e+00 : f32
      %13 = vector.broadcast %cst : f32 to vector<32x1xf32>
      %c0 = arith.constant 0 : index
      %c0_5 = arith.constant 0 : index
      %14 = vector.load %arg10[%c0, %c0_5] : memref<32x1xf32, #tpu.memory_space<vmem>>, vector<32x1xf32>
      tpu.vector_store %arg10[%c0, %c0_5], %13 {strides = array<i32>} : memref<32x1xf32, #tpu.memory_space<vmem>>, vector<32x1xf32>,
      %cst_6 = arith.constant 0.000000e+00 : f32
      %15 = vector.broadcast %cst_6 : f32 to vector<32x1xf32>
      %c0_7 = arith.constant 0 : index
      %c0_8 = arith.constant 0 : index
      %16 = vector.load %arg11[%c0_7, %c0_8] : memref<32x1xf32, #tpu.memory_space<vmem>>, vector<32x1xf32>
      tpu.vector_store %arg11[%c0_7, %c0_8], %15 {strides = array<i32>} : memref<32x1xf32, #tpu.memory_space<vmem>>, vector<32x1xf32>,
    } else {
    }
    %c0_i32_2 = arith.constant 0 : i32
    %7 = arith.cmpi eq, %arg0, %c0_i32_2 : i32
    %8 = arith.extui %7 : i1 to i32
    %c0_i32_3 = arith.constant 0 : i32
    %9 = arith.cmpi ne, %8, %c0_i32_3 : i32
    scf.if %9 {
      %c0 = arith.constant 0 : index
      %c0_5 = arith.constant 0 : index
      %13 = vector.load %arg3[%c0, %c0_5] : memref<32x16xbf16, #tpu.memory_space<vmem>>, vector<32x16xbf16>
      %c0_6 = arith.constant 0 : index
      %c0_7 = arith.constant 0 : index
      %14 = vector.load %arg2[%c0_6, %c0_7] : memref<16x512xbf16, #tpu.memory_space<vmem>>, vector<16x512xbf16>
      %cst = arith.constant dense<0.000000e+00> : vector<32x512xf32>
      %15 = tpu.matmul %13, %14, %cst {dimension_numbers = #tpu.dot_dimension_numbers<[1], [0], [0], [1], [0, 0, 1, 1], [], []>} : vector<32x16xbf16>, vector<16x512xbf16>, vector<32x512xf32> -> vector<32x512xf32>
      %c0_8 = arith.constant 0 : index
      %c0_9 = arith.constant 0 : index
      %16 = vector.load %arg4[%c0_8, %c0_9] : memref<32x1xf32, #tpu.memory_space<vmem>>, vector<32x1xf32>
      %17 = vector.broadcast %16 : vector<32x1xf32> to vector<32x512xf32>
      %18 = arith.addf %15, %17 : vector<32x512xf32>
      %c0_10 = arith.constant 0 : index
      %19 = arith.index_cast %1 : i32 to index
      %20 = vector.load %arg9[%c0_10, %19] : memref<32x512xf32, #tpu.memory_space<vmem>>, vector<32x512xf32>
      tpu.vector_store %arg9[%c0_10, %19], %18 {strides = array<i32>} : memref<32x512xf32, #tpu.memory_space<vmem>>, vector<32x512xf32>,
      %c0_11 = arith.constant 0 : index
      %c0_12 = arith.constant 0 : index
      %21 = vector.load %arg10[%c0_11, %c0_12] : memref<32x1xf32, #tpu.memory_space<vmem>>, vector<32x1xf32>
      %cst_13 = arith.constant dense<0.000000e+00> : vector<32xf32>
      %22 = vector.multi_reduction <add>, %18, %cst_13 [1] : vector<32x512xf32> to vector<32xf32>
      %23 = vector.shape_cast %22 : vector<32xf32> to vector<32x1xf32>
      %24 = arith.addf %21, %23 : vector<32x1xf32>
      %c0_14 = arith.constant 0 : index
      %c0_15 = arith.constant 0 : index
      %25 = vector.load %arg10[%c0_14, %c0_15] : memref<32x1xf32, #tpu.memory_space<vmem>>, vector<32x1xf32>
      tpu.vector_store %arg10[%c0_14, %c0_15], %24 {strides = array<i32>} : memref<32x1xf32, #tpu.memory_space<vmem>>, vector<32x1xf32>,
      %c0_16 = arith.constant 0 : index
      %c0_17 = arith.constant 0 : index
      %26 = vector.load %arg11[%c0_16, %c0_17] : memref<32x1xf32, #tpu.memory_space<vmem>>, vector<32x1xf32>
      %27 = arith.mulf %18, %18 : vector<32x512xf32>
      %cst_18 = arith.constant dense<0.000000e+00> : vector<32xf32>
      %28 = vector.multi_reduction <add>, %27, %cst_18 [1] : vector<32x512xf32> to vector<32xf32>
      %29 = vector.shape_cast %28 : vector<32xf32> to vector<32x1xf32>
      %30 = arith.addf %26, %29 : vector<32x1xf32>
      %c0_19 = arith.constant 0 : index
      %c0_20 = arith.constant 0 : index
      %31 = vector.load %arg11[%c0_19, %c0_20] : memref<32x1xf32, #tpu.memory_space<vmem>>, vector<32x1xf32>
      tpu.vector_store %arg11[%c0_19, %c0_20], %30 {strides = array<i32>} : memref<32x1xf32, #tpu.memory_space<vmem>>, vector<32x1xf32>,
    } else {
    }
    %c1_i32 = arith.constant 1 : i32
    %10 = arith.cmpi eq, %arg0, %c1_i32 : i32
    %11 = arith.extui %10 : i1 to i32
    %c0_i32_4 = arith.constant 0 : i32
    %12 = arith.cmpi ne, %11, %c0_i32_4 : i32
    scf.if %12 {
      %c0_i32_5 = arith.constant 0 : i32
      %13 = arith.cmpi eq, %arg1, %c0_i32_5 : i32
      %14 = arith.extui %13 : i1 to i32
      %c0_i32_6 = arith.constant 0 : i32
      %15 = arith.cmpi ne, %14, %c0_i32_6 : i32
      scf.if %15 {
        %c0_43 = arith.constant 0 : index
        %c0_44 = arith.constant 0 : index
        %76 = vector.load %arg10[%c0_43, %c0_44] : memref<32x1xf32, #tpu.memory_space<vmem>>, vector<8x1xf32>
        %c8_45 = arith.constant 8 : index
        %c0_46 = arith.constant 0 : index
        %77 = vector.load %arg10[%c8_45, %c0_46] : memref<32x1xf32, #tpu.memory_space<vmem>>, vector<8x1xf32>
        %78 = arith.addf %76, %77 : vector<8x1xf32>
        %c16_47 = arith.constant 16 : index
        %c0_48 = arith.constant 0 : index
        %79 = vector.load %arg10[%c16_47, %c0_48] : memref<32x1xf32, #tpu.memory_space<vmem>>, vector<8x1xf32>
        %80 = arith.addf %78, %79 : vector<8x1xf32>
        %c24_49 = arith.constant 24 : index
        %c0_50 = arith.constant 0 : index
        %81 = vector.load %arg10[%c24_49, %c0_50] : memref<32x1xf32, #tpu.memory_space<vmem>>, vector<8x1xf32>
        %82 = arith.addf %80, %81 : vector<8x1xf32>
        %c0_51 = arith.constant 0 : index
        %c0_52 = arith.constant 0 : index
        %83 = vector.load %arg11[%c0_51, %c0_52] : memref<32x1xf32, #tpu.memory_space<vmem>>, vector<8x1xf32>
        %c8_53 = arith.constant 8 : index
        %c0_54 = arith.constant 0 : index
        %84 = vector.load %arg11[%c8_53, %c0_54] : memref<32x1xf32, #tpu.memory_space<vmem>>, vector<8x1xf32>
        %85 = arith.addf %83, %84 : vector<8x1xf32>
        %c16_55 = arith.constant 16 : index
        %c0_56 = arith.constant 0 : index
        %86 = vector.load %arg11[%c16_55, %c0_56] : memref<32x1xf32, #tpu.memory_space<vmem>>, vector<8x1xf32>
        %87 = arith.addf %85, %86 : vector<8x1xf32>
        %c24_57 = arith.constant 24 : index
        %c0_58 = arith.constant 0 : index
        %88 = vector.load %arg11[%c24_57, %c0_58] : memref<32x1xf32, #tpu.memory_space<vmem>>, vector<8x1xf32>
        %89 = arith.addf %87, %88 : vector<8x1xf32>
        %cst_59 = arith.constant 4.8828125E-4 : f32
        %90 = vector.broadcast %cst_59 : f32 to vector<8x1xf32>
        %91 = arith.mulf %82, %90 : vector<8x1xf32>
        %cst_60 = arith.constant 4.8828125E-4 : f32
        %92 = vector.broadcast %cst_60 : f32 to vector<8x1xf32>
        %93 = arith.mulf %89, %92 : vector<8x1xf32>
        %94 = arith.mulf %91, %91 : vector<8x1xf32>
        %95 = arith.subf %93, %94 : vector<8x1xf32>
        %cst_61 = arith.constant 0.000000e+00 : f32
        %96 = vector.broadcast %cst_61 : f32 to vector<8x1xf32>
        %97 = arith.maximumf %95, %96 : vector<8x1xf32>
        %c0_62 = arith.constant 0 : index
        %c0_63 = arith.constant 0 : index
        %98 = vector.load %arg5[%c0_62, %c0_63] : memref<8x1xf32, #tpu.memory_space<vmem>>, vector<8x1xf32>
        %cst_64 = arith.constant 9.99999974E-6 : f32
        %99 = vector.broadcast %cst_64 : f32 to vector<8x1xf32>
        %100 = arith.addf %97, %99 : vector<8x1xf32>
        %101 = math.rsqrt %100 : vector<8x1xf32>
        %102 = arith.mulf %98, %101 : vector<8x1xf32>
        %c0_65 = arith.constant 0 : index
        %c0_66 = arith.constant 0 : index
        %103 = vector.load %arg12[%c0_65, %c0_66] : memref<8x1xf32, #tpu.memory_space<vmem>>, vector<8x1xf32>
        tpu.vector_store %arg12[%c0_65, %c0_66], %102 {strides = array<i32>} : memref<8x1xf32, #tpu.memory_space<vmem>>, vector<8x1xf32>,
        %c0_67 = arith.constant 0 : index
        %c0_68 = arith.constant 0 : index
        %104 = vector.load %arg6[%c0_67, %c0_68] : memref<8x1xf32, #tpu.memory_space<vmem>>, vector<8x1xf32>
        %105 = arith.mulf %91, %102 : vector<8x1xf32>
        %106 = arith.subf %104, %105 : vector<8x1xf32>
        %c0_69 = arith.constant 0 : index
        %c0_70 = arith.constant 0 : index
        %107 = vector.load %arg13[%c0_69, %c0_70] : memref<8x1xf32, #tpu.memory_space<vmem>>, vector<8x1xf32>
        tpu.vector_store %arg13[%c0_69, %c0_70], %106 {strides = array<i32>} : memref<8x1xf32, #tpu.memory_space<vmem>>, vector<8x1xf32>,
      } else {
      }
      %c0 = arith.constant 0 : index
      %16 = arith.index_cast %1 : i32 to index
      %17 = vector.load %arg9[%c0, %16] : memref<32x512xf32, #tpu.memory_space<vmem>>, vector<8x512xf32>
      %18 = vector.extract_strided_slice %17 {offsets = [0, 0], sizes = [3, 512], strides = [1, 1]} : vector<8x512xf32> to vector<3x512xf32>
      %c0_7 = arith.constant 0 : index
      %c0_8 = arith.constant 0 : index
      %c0_9 = arith.constant 0 : index
      %19 = vector.load %arg8[%c0_7, %c0_8, %c0_9] : memref<4x3x512xf32, #tpu.memory_space<vmem>>, vector<1x3x512xf32>
      %20 = vector.shape_cast %19 : vector<1x3x512xf32> to vector<3x512xf32>
      %21 = vector.shape_cast %18 : vector<3x512xf32> to vector<1x3x512xf32>
      tpu.vector_store %arg8[%c0_7, %c0_8, %c0_9], %21 {strides = array<i32>} : memref<4x3x512xf32, #tpu.memory_space<vmem>>, vector<1x3x512xf32>,
      %c0_10 = arith.constant 0 : index
      %c0_11 = arith.constant 0 : index
      %22 = vector.load %arg12[%c0_10, %c0_11] : memref<8x1xf32, #tpu.memory_space<vmem>>, vector<8x1xf32>
      %23 = vector.broadcast %22 : vector<8x1xf32> to vector<8x512xf32>
      %24 = arith.mulf %17, %23 : vector<8x512xf32>
      %c0_12 = arith.constant 0 : index
      %c0_13 = arith.constant 0 : index
      %25 = vector.load %arg13[%c0_12, %c0_13] : memref<8x1xf32, #tpu.memory_space<vmem>>, vector<8x1xf32>
      %26 = vector.broadcast %25 : vector<8x1xf32> to vector<8x512xf32>
      %27 = arith.addf %24, %26 : vector<8x512xf32>
      %cst = arith.constant 0.000000e+00 : f32
      %28 = vector.broadcast %cst : f32 to vector<8x512xf32>
      %29 = arith.maximumf %27, %28 : vector<8x512xf32>
      %c0_14 = arith.constant 0 : index
      %c0_15 = arith.constant 0 : index
      %30 = vector.load %arg7[%c0_14, %c0_15] : memref<32x512xf32, #tpu.memory_space<vmem>>, vector<8x512xf32>
      tpu.vector_store %arg7[%c0_14, %c0_15], %29 {strides = array<i32>} : memref<32x512xf32, #tpu.memory_space<vmem>>, vector<8x512xf32>,
      %c8 = arith.constant 8 : index
      %31 = arith.index_cast %1 : i32 to index
      %32 = vector.load %arg9[%c8, %31] : memref<32x512xf32, #tpu.memory_space<vmem>>, vector<8x512xf32>
      %33 = vector.extract_strided_slice %32 {offsets = [0, 0], sizes = [3, 512], strides = [1, 1]} : vector<8x512xf32> to vector<3x512xf32>
      %c1 = arith.constant 1 : index
      %c0_16 = arith.constant 0 : index
      %c0_17 = arith.constant 0 : index
      %34 = vector.load %arg8[%c1, %c0_16, %c0_17] : memref<4x3x512xf32, #tpu.memory_space<vmem>>, vector<1x3x512xf32>
      %35 = vector.shape_cast %34 : vector<1x3x512xf32> to vector<3x512xf32>
      %36 = vector.shape_cast %33 : vector<3x512xf32> to vector<1x3x512xf32>
      tpu.vector_store %arg8[%c1, %c0_16, %c0_17], %36 {strides = array<i32>} : memref<4x3x512xf32, #tpu.memory_space<vmem>>, vector<1x3x512xf32>,
      %c0_18 = arith.constant 0 : index
      %c0_19 = arith.constant 0 : index
      %37 = vector.load %arg12[%c0_18, %c0_19] : memref<8x1xf32, #tpu.memory_space<vmem>>, vector<8x1xf32>
      %38 = vector.broadcast %37 : vector<8x1xf32> to vector<8x512xf32>
      %39 = arith.mulf %32, %38 : vector<8x512xf32>
      %c0_20 = arith.constant 0 : index
      %c0_21 = arith.constant 0 : index
      %40 = vector.load %arg13[%c0_20, %c0_21] : memref<8x1xf32, #tpu.memory_space<vmem>>, vector<8x1xf32>
      %41 = vector.broadcast %40 : vector<8x1xf32> to vector<8x512xf32>
      %42 = arith.addf %39, %41 : vector<8x512xf32>
      %cst_22 = arith.constant 0.000000e+00 : f32
      %43 = vector.broadcast %cst_22 : f32 to vector<8x512xf32>
      %44 = arith.maximumf %42, %43 : vector<8x512xf32>
      %c8_23 = arith.constant 8 : index
      %c0_24 = arith.constant 0 : index
      %45 = vector.load %arg7[%c8_23, %c0_24] : memref<32x512xf32, #tpu.memory_space<vmem>>, vector<8x512xf32>
      tpu.vector_store %arg7[%c8_23, %c0_24], %44 {strides = array<i32>} : memref<32x512xf32, #tpu.memory_space<vmem>>, vector<8x512xf32>,
      %c16 = arith.constant 16 : index
      %46 = arith.index_cast %1 : i32 to index
      %47 = vector.load %arg9[%c16, %46] : memref<32x512xf32, #tpu.memory_space<vmem>>, vector<8x512xf32>
      %48 = vector.extract_strided_slice %47 {offsets = [0, 0], sizes = [3, 512], strides = [1, 1]} : vector<8x512xf32> to vector<3x512xf32>
      %c2 = arith.constant 2 : index
      %c0_25 = arith.constant 0 : index
      %c0_26 = arith.constant 0 : index
      %49 = vector.load %arg8[%c2, %c0_25, %c0_26] : memref<4x3x512xf32, #tpu.memory_space<vmem>>, vector<1x3x512xf32>
      %50 = vector.shape_cast %49 : vector<1x3x512xf32> to vector<3x512xf32>
      %51 = vector.shape_cast %48 : vector<3x512xf32> to vector<1x3x512xf32>
      tpu.vector_store %arg8[%c2, %c0_25, %c0_26], %51 {strides = array<i32>} : memref<4x3x512xf32, #tpu.memory_space<vmem>>, vector<1x3x512xf32>,
      %c0_27 = arith.constant 0 : index
      %c0_28 = arith.constant 0 : index
      %52 = vector.load %arg12[%c0_27, %c0_28] : memref<8x1xf32, #tpu.memory_space<vmem>>, vector<8x1xf32>
      %53 = vector.broadcast %52 : vector<8x1xf32> to vector<8x512xf32>
      %54 = arith.mulf %47, %53 : vector<8x512xf32>
      %c0_29 = arith.constant 0 : index
      %c0_30 = arith.constant 0 : index
      %55 = vector.load %arg13[%c0_29, %c0_30] : memref<8x1xf32, #tpu.memory_space<vmem>>, vector<8x1xf32>
      %56 = vector.broadcast %55 : vector<8x1xf32> to vector<8x512xf32>
      %57 = arith.addf %54, %56 : vector<8x512xf32>
      %cst_31 = arith.constant 0.000000e+00 : f32
      %58 = vector.broadcast %cst_31 : f32 to vector<8x512xf32>
      %59 = arith.maximumf %57, %58 : vector<8x512xf32>
      %c16_32 = arith.constant 16 : index
      %c0_33 = arith.constant 0 : index
      %60 = vector.load %arg7[%c16_32, %c0_33] : memref<32x512xf32, #tpu.memory_space<vmem>>, vector<8x512xf32>
      tpu.vector_store %arg7[%c16_32, %c0_33], %59 {strides = array<i32>} : memref<32x512xf32, #tpu.memory_space<vmem>>, vector<8x512xf32>,
      %c24 = arith.constant 24 : index
      %61 = arith.index_cast %1 : i32 to index
      %62 = vector.load %arg9[%c24, %61] : memref<32x512xf32, #tpu.memory_space<vmem>>, vector<8x512xf32>
      %63 = vector.extract_strided_slice %62 {offsets = [0, 0], sizes = [3, 512], strides = [1, 1]} : vector<8x512xf32> to vector<3x512xf32>
      %c3 = arith.constant 3 : index
      %c0_34 = arith.constant 0 : index
      %c0_35 = arith.constant 0 : index
      %64 = vector.load %arg8[%c3, %c0_34, %c0_35] : memref<4x3x512xf32, #tpu.memory_space<vmem>>, vector<1x3x512xf32>
      %65 = vector.shape_cast %64 : vector<1x3x512xf32> to vector<3x512xf32>
      %66 = vector.shape_cast %63 : vector<3x512xf32> to vector<1x3x512xf32>
      tpu.vector_store %arg8[%c3, %c0_34, %c0_35], %66 {strides = array<i32>} : memref<4x3x512xf32, #tpu.memory_space<vmem>>, vector<1x3x512xf32>,
      %c0_36 = arith.constant 0 : index
      %c0_37 = arith.constant 0 : index
      %67 = vector.load %arg12[%c0_36, %c0_37] : memref<8x1xf32, #tpu.memory_space<vmem>>, vector<8x1xf32>
      %68 = vector.broadcast %67 : vector<8x1xf32> to vector<8x512xf32>
      %69 = arith.mulf %62, %68 : vector<8x512xf32>
      %c0_38 = arith.constant 0 : index
      %c0_39 = arith.constant 0 : index
      %70 = vector.load %arg13[%c0_38, %c0_39] : memref<8x1xf32, #tpu.memory_space<vmem>>, vector<8x1xf32>
      %71 = vector.broadcast %70 : vector<8x1xf32> to vector<8x512xf32>
      %72 = arith.addf %69, %71 : vector<8x512xf32>
      %cst_40 = arith.constant 0.000000e+00 : f32
      %73 = vector.broadcast %cst_40 : f32 to vector<8x512xf32>
      %74 = arith.maximumf %72, %73 : vector<8x512xf32>
      %c24_41 = arith.constant 24 : index
      %c0_42 = arith.constant 0 : index
      %75 = vector.load %arg7[%c24_41, %c0_42] : memref<32x512xf32, #tpu.memory_space<vmem>>, vector<8x512xf32>
      tpu.vector_store %arg7[%c24_41, %c0_42], %74 {strides = array<i32>} : memref<32x512xf32, #tpu.memory_space<vmem>>, vector<8x512xf32>,
    } else {
    }
    return
  }
  func.func @transform_0(%arg0: i32, %arg1: i32) -> (i32, i32) {
    %c1_i32 = arith.constant 1 : i32
    %0 = arith.subi %c1_i32, %arg0 : i32
    %1 = arith.muli %arg1, %0 : i32
    %c0_i32 = arith.constant 0 : i32
    %c0_i32_0 = arith.constant 0 : i32
    return %c0_i32, %1 : i32, i32
  }
  func.func @transform_1(%arg0: i32, %arg1: i32) -> (i32, i32) {
    %c0_i32 = arith.constant 0 : i32
    %c0_i32_0 = arith.constant 0 : i32
    %c0_i32_1 = arith.constant 0 : i32
    return %c0_i32, %c0_i32_0 : i32, i32
  }
  func.func @transform_2(%arg0: i32, %arg1: i32) -> (i32, i32) {
    %c0_i32 = arith.constant 0 : i32
    %c0_i32_0 = arith.constant 0 : i32
    %c0_i32_1 = arith.constant 0 : i32
    return %c0_i32, %c0_i32_0 : i32, i32
  }
  func.func @transform_3(%arg0: i32, %arg1: i32) -> (i32, i32) {
    %c0_i32 = arith.constant 0 : i32
    %c0_i32_0 = arith.constant 0 : i32
    %c0_i32_1 = arith.constant 0 : i32
    return %c0_i32, %c0_i32_0 : i32, i32
  }
  func.func @transform_4(%arg0: i32, %arg1: i32) -> (i32, i32) {
    %c0_i32 = arith.constant 0 : i32
    %c0_i32_0 = arith.constant 0 : i32
    %c0_i32_1 = arith.constant 0 : i32
    return %c0_i32, %c0_i32_0 : i32, i32
  }
  func.func @transform_5(%arg0: i32, %arg1: i32) -> (i32, i32) {
    %0 = arith.muli %arg1, %arg0 : i32
    %c0_i32 = arith.constant 0 : i32
    %c0_i32_0 = arith.constant 0 : i32
    return %c0_i32, %0 : i32, i32
  }
  func.func @transform_6(%arg0: i32, %arg1: i32) -> (i32, i32, i32) {
    %0 = arith.muli %arg1, %arg0 : i32
    %c0_i32 = arith.constant 0 : i32
    %c0_i32_0 = arith.constant 0 : i32
    %c0_i32_1 = arith.constant 0 : i32
    return %c0_i32, %c0_i32_0, %0 : i32, i32, i32
  }
}

module attributes {stable_mosaic.version = 11 : i64} {
  func.func @kernel(%arg0: i32, %arg1: memref<4x3x1x16x16xf32, #tpu.memory_space<vmem>>, %arg2: memref<2x128x16xf32, #tpu.memory_space<vmem>>, %arg3: memref<2x16x128xf32, #tpu.memory_space<vmem>>, %arg4: memref<1x3x128x128xf32, #tpu.memory_space<vmem>>) attributes {dimension_semantics = [#tpu.dimension_semantics<parallel>], iteration_bounds = array<i64: 2>, scalar_prefetch = 0 : i64, scratch_operands = 0 : i64, tpu.core_type = #tpu.core_type<tc>, window_params = [{transform_indices = @transform_0, window_bounds = array<i64: 4, 3, 1, 16, 16>}, {pipeline_mode = #tpu.pipeline_mode<synchronous>, transform_indices = @transform_1, window_bounds = array<i64: 2, 128, 16>}, {pipeline_mode = #tpu.pipeline_mode<synchronous>, transform_indices = @transform_2, window_bounds = array<i64: 2, 16, 128>}, {transform_indices = @transform_3, window_bounds = array<i64: 1, 3, 128, 128>}]} {
    %cst = arith.constant 0.000000e+00 : f32
    %0 = vector.broadcast %cst : f32 to vector<128x128xf32>
    %cst_0 = arith.constant 0.000000e+00 : f32
    %1 = vector.broadcast %cst_0 : f32 to vector<128x16xf32>
    %c0 = arith.constant 0 : index
    %c0_1 = arith.constant 0 : index
    %c0_2 = arith.constant 0 : index
    %c0_3 = arith.constant 0 : index
    %c0_4 = arith.constant 0 : index
    %2 = vector.load %arg1[%c0, %c0_1, %c0_2, %c0_3, %c0_4] : memref<4x3x1x16x16xf32, #tpu.memory_space<vmem>>, vector<1x1x1x16x16xf32>
    %3 = vector.shape_cast %2 : vector<1x1x1x16x16xf32> to vector<16x16xf32>
    %c0_5 = arith.constant 0 : index
    %c0_6 = arith.constant 0 : index
    %c0_7 = arith.constant 0 : index
    %4 = vector.load %arg2[%c0_5, %c0_6, %c0_7] : memref<2x128x16xf32, #tpu.memory_space<vmem>>, vector<1x128x16xf32>
    %5 = vector.shape_cast %4 : vector<1x128x16xf32> to vector<128x16xf32>
    %cst_8 = arith.constant dense<0.000000e+00> : vector<128x16xf32>
    %6 = tpu.matmul %5, %3, %cst_8 {dimension_numbers = #tpu.dot_dimension_numbers<[1], [0], [0], [1], [0, 0, 1, 1], [], []>} : vector<128x16xf32>, vector<16x16xf32>, vector<128x16xf32> -> vector<128x16xf32>
    %7 = arith.addf %1, %6 : vector<128x16xf32>
    %c2 = arith.constant 2 : index
    %c0_9 = arith.constant 0 : index
    %c0_10 = arith.constant 0 : index
    %c0_11 = arith.constant 0 : index
    %c0_12 = arith.constant 0 : index
    %8 = vector.load %arg1[%c2, %c0_9, %c0_10, %c0_11, %c0_12] : memref<4x3x1x16x16xf32, #tpu.memory_space<vmem>>, vector<1x1x1x16x16xf32>
    %9 = vector.shape_cast %8 : vector<1x1x1x16x16xf32> to vector<16x16xf32>
    %c1 = arith.constant 1 : index
    %c0_13 = arith.constant 0 : index
    %c0_14 = arith.constant 0 : index
    %10 = vector.load %arg2[%c1, %c0_13, %c0_14] : memref<2x128x16xf32, #tpu.memory_space<vmem>>, vector<1x128x16xf32>
    %11 = vector.shape_cast %10 : vector<1x128x16xf32> to vector<128x16xf32>
    %cst_15 = arith.constant dense<0.000000e+00> : vector<128x16xf32>
    %12 = tpu.matmul %11, %9, %cst_15 {dimension_numbers = #tpu.dot_dimension_numbers<[1], [0], [0], [1], [0, 0, 1, 1], [], []>} : vector<128x16xf32>, vector<16x16xf32>, vector<128x16xf32> -> vector<128x16xf32>
    %13 = arith.addf %7, %12 : vector<128x16xf32>
    %c0_16 = arith.constant 0 : index
    %c0_17 = arith.constant 0 : index
    %c0_18 = arith.constant 0 : index
    %14 = vector.load %arg3[%c0_16, %c0_17, %c0_18] : memref<2x16x128xf32, #tpu.memory_space<vmem>>, vector<1x16x128xf32>
    %15 = vector.shape_cast %14 : vector<1x16x128xf32> to vector<16x128xf32>
    %cst_19 = arith.constant dense<0.000000e+00> : vector<128x128xf32>
    %16 = tpu.matmul %13, %15, %cst_19 {dimension_numbers = #tpu.dot_dimension_numbers<[1], [0], [0], [1], [0, 0, 1, 1], [], []>} : vector<128x16xf32>, vector<16x128xf32>, vector<128x128xf32> -> vector<128x128xf32>
    %17 = arith.addf %0, %16 : vector<128x128xf32>
    %cst_20 = arith.constant 0.000000e+00 : f32
    %18 = vector.broadcast %cst_20 : f32 to vector<128x16xf32>
    %c1_21 = arith.constant 1 : index
    %c0_22 = arith.constant 0 : index
    %c0_23 = arith.constant 0 : index
    %c0_24 = arith.constant 0 : index
    %c0_25 = arith.constant 0 : index
    %19 = vector.load %arg1[%c1_21, %c0_22, %c0_23, %c0_24, %c0_25] : memref<4x3x1x16x16xf32, #tpu.memory_space<vmem>>, vector<1x1x1x16x16xf32>
    %20 = vector.shape_cast %19 : vector<1x1x1x16x16xf32> to vector<16x16xf32>
    %c0_26 = arith.constant 0 : index
    %c0_27 = arith.constant 0 : index
    %c0_28 = arith.constant 0 : index
    %21 = vector.load %arg2[%c0_26, %c0_27, %c0_28] : memref<2x128x16xf32, #tpu.memory_space<vmem>>, vector<1x128x16xf32>
    %22 = vector.shape_cast %21 : vector<1x128x16xf32> to vector<128x16xf32>
    %cst_29 = arith.constant dense<0.000000e+00> : vector<128x16xf32>
    %23 = tpu.matmul %22, %20, %cst_29 {dimension_numbers = #tpu.dot_dimension_numbers<[1], [0], [0], [1], [0, 0, 1, 1], [], []>} : vector<128x16xf32>, vector<16x16xf32>, vector<128x16xf32> -> vector<128x16xf32>
    %24 = arith.addf %18, %23 : vector<128x16xf32>
    %c3 = arith.constant 3 : index
    %c0_30 = arith.constant 0 : index
    %c0_31 = arith.constant 0 : index
    %c0_32 = arith.constant 0 : index
    %c0_33 = arith.constant 0 : index
    %25 = vector.load %arg1[%c3, %c0_30, %c0_31, %c0_32, %c0_33] : memref<4x3x1x16x16xf32, #tpu.memory_space<vmem>>, vector<1x1x1x16x16xf32>
    %26 = vector.shape_cast %25 : vector<1x1x1x16x16xf32> to vector<16x16xf32>
    %c1_34 = arith.constant 1 : index
    %c0_35 = arith.constant 0 : index
    %c0_36 = arith.constant 0 : index
    %27 = vector.load %arg2[%c1_34, %c0_35, %c0_36] : memref<2x128x16xf32, #tpu.memory_space<vmem>>, vector<1x128x16xf32>
    %28 = vector.shape_cast %27 : vector<1x128x16xf32> to vector<128x16xf32>
    %cst_37 = arith.constant dense<0.000000e+00> : vector<128x16xf32>
    %29 = tpu.matmul %28, %26, %cst_37 {dimension_numbers = #tpu.dot_dimension_numbers<[1], [0], [0], [1], [0, 0, 1, 1], [], []>} : vector<128x16xf32>, vector<16x16xf32>, vector<128x16xf32> -> vector<128x16xf32>
    %30 = arith.addf %24, %29 : vector<128x16xf32>
    %c1_38 = arith.constant 1 : index
    %c0_39 = arith.constant 0 : index
    %c0_40 = arith.constant 0 : index
    %31 = vector.load %arg3[%c1_38, %c0_39, %c0_40] : memref<2x16x128xf32, #tpu.memory_space<vmem>>, vector<1x16x128xf32>
    %32 = vector.shape_cast %31 : vector<1x16x128xf32> to vector<16x128xf32>
    %cst_41 = arith.constant dense<0.000000e+00> : vector<128x128xf32>
    %33 = tpu.matmul %30, %32, %cst_41 {dimension_numbers = #tpu.dot_dimension_numbers<[1], [0], [0], [1], [0, 0, 1, 1], [], []>} : vector<128x16xf32>, vector<16x128xf32>, vector<128x128xf32> -> vector<128x128xf32>
    %34 = arith.addf %17, %33 : vector<128x128xf32>
    %c0_42 = arith.constant 0 : index
    %c0_43 = arith.constant 0 : index
    %c0_44 = arith.constant 0 : index
    %c0_45 = arith.constant 0 : index
    %35 = vector.load %arg4[%c0_42, %c0_43, %c0_44, %c0_45] : memref<1x3x128x128xf32, #tpu.memory_space<vmem>>, vector<1x1x128x128xf32>
    %36 = vector.shape_cast %35 : vector<1x1x128x128xf32> to vector<128x128xf32>
    %37 = vector.shape_cast %34 : vector<128x128xf32> to vector<1x1x128x128xf32>
    tpu.vector_store %arg4[%c0_42, %c0_43, %c0_44, %c0_45], %37 {strides = array<i32>} : memref<1x3x128x128xf32, #tpu.memory_space<vmem>>, vector<1x1x128x128xf32>,
    %cst_46 = arith.constant 0.000000e+00 : f32
    %38 = vector.broadcast %cst_46 : f32 to vector<128x128xf32>
    %cst_47 = arith.constant 0.000000e+00 : f32
    %39 = vector.broadcast %cst_47 : f32 to vector<128x16xf32>
    %c0_48 = arith.constant 0 : index
    %c1_49 = arith.constant 1 : index
    %c0_50 = arith.constant 0 : index
    %c0_51 = arith.constant 0 : index
    %c0_52 = arith.constant 0 : index
    %40 = vector.load %arg1[%c0_48, %c1_49, %c0_50, %c0_51, %c0_52] : memref<4x3x1x16x16xf32, #tpu.memory_space<vmem>>, vector<1x1x1x16x16xf32>
    %41 = vector.shape_cast %40 : vector<1x1x1x16x16xf32> to vector<16x16xf32>
    %c0_53 = arith.constant 0 : index
    %c0_54 = arith.constant 0 : index
    %c0_55 = arith.constant 0 : index
    %42 = vector.load %arg2[%c0_53, %c0_54, %c0_55] : memref<2x128x16xf32, #tpu.memory_space<vmem>>, vector<1x128x16xf32>
    %43 = vector.shape_cast %42 : vector<1x128x16xf32> to vector<128x16xf32>
    %cst_56 = arith.constant dense<0.000000e+00> : vector<128x16xf32>
    %44 = tpu.matmul %43, %41, %cst_56 {dimension_numbers = #tpu.dot_dimension_numbers<[1], [0], [0], [1], [0, 0, 1, 1], [], []>} : vector<128x16xf32>, vector<16x16xf32>, vector<128x16xf32> -> vector<128x16xf32>
    %45 = arith.addf %39, %44 : vector<128x16xf32>
    %c2_57 = arith.constant 2 : index
    %c1_58 = arith.constant 1 : index
    %c0_59 = arith.constant 0 : index
    %c0_60 = arith.constant 0 : index
    %c0_61 = arith.constant 0 : index
    %46 = vector.load %arg1[%c2_57, %c1_58, %c0_59, %c0_60, %c0_61] : memref<4x3x1x16x16xf32, #tpu.memory_space<vmem>>, vector<1x1x1x16x16xf32>
    %47 = vector.shape_cast %46 : vector<1x1x1x16x16xf32> to vector<16x16xf32>
    %c1_62 = arith.constant 1 : index
    %c0_63 = arith.constant 0 : index
    %c0_64 = arith.constant 0 : index
    %48 = vector.load %arg2[%c1_62, %c0_63, %c0_64] : memref<2x128x16xf32, #tpu.memory_space<vmem>>, vector<1x128x16xf32>
    %49 = vector.shape_cast %48 : vector<1x128x16xf32> to vector<128x16xf32>
    %cst_65 = arith.constant dense<0.000000e+00> : vector<128x16xf32>
    %50 = tpu.matmul %49, %47, %cst_65 {dimension_numbers = #tpu.dot_dimension_numbers<[1], [0], [0], [1], [0, 0, 1, 1], [], []>} : vector<128x16xf32>, vector<16x16xf32>, vector<128x16xf32> -> vector<128x16xf32>
    %51 = arith.addf %45, %50 : vector<128x16xf32>
    %c0_66 = arith.constant 0 : index
    %c0_67 = arith.constant 0 : index
    %c0_68 = arith.constant 0 : index
    %52 = vector.load %arg3[%c0_66, %c0_67, %c0_68] : memref<2x16x128xf32, #tpu.memory_space<vmem>>, vector<1x16x128xf32>
    %53 = vector.shape_cast %52 : vector<1x16x128xf32> to vector<16x128xf32>
    %cst_69 = arith.constant dense<0.000000e+00> : vector<128x128xf32>
    %54 = tpu.matmul %51, %53, %cst_69 {dimension_numbers = #tpu.dot_dimension_numbers<[1], [0], [0], [1], [0, 0, 1, 1], [], []>} : vector<128x16xf32>, vector<16x128xf32>, vector<128x128xf32> -> vector<128x128xf32>
    %55 = arith.addf %38, %54 : vector<128x128xf32>
    %cst_70 = arith.constant 0.000000e+00 : f32
    %56 = vector.broadcast %cst_70 : f32 to vector<128x16xf32>
    %c1_71 = arith.constant 1 : index
    %c1_72 = arith.constant 1 : index
    %c0_73 = arith.constant 0 : index
    %c0_74 = arith.constant 0 : index
    %c0_75 = arith.constant 0 : index
    %57 = vector.load %arg1[%c1_71, %c1_72, %c0_73, %c0_74, %c0_75] : memref<4x3x1x16x16xf32, #tpu.memory_space<vmem>>, vector<1x1x1x16x16xf32>
    %58 = vector.shape_cast %57 : vector<1x1x1x16x16xf32> to vector<16x16xf32>
    %c0_76 = arith.constant 0 : index
    %c0_77 = arith.constant 0 : index
    %c0_78 = arith.constant 0 : index
    %59 = vector.load %arg2[%c0_76, %c0_77, %c0_78] : memref<2x128x16xf32, #tpu.memory_space<vmem>>, vector<1x128x16xf32>
    %60 = vector.shape_cast %59 : vector<1x128x16xf32> to vector<128x16xf32>
    %cst_79 = arith.constant dense<0.000000e+00> : vector<128x16xf32>
    %61 = tpu.matmul %60, %58, %cst_79 {dimension_numbers = #tpu.dot_dimension_numbers<[1], [0], [0], [1], [0, 0, 1, 1], [], []>} : vector<128x16xf32>, vector<16x16xf32>, vector<128x16xf32> -> vector<128x16xf32>
    %62 = arith.addf %56, %61 : vector<128x16xf32>
    %c3_80 = arith.constant 3 : index
    %c1_81 = arith.constant 1 : index
    %c0_82 = arith.constant 0 : index
    %c0_83 = arith.constant 0 : index
    %c0_84 = arith.constant 0 : index
    %63 = vector.load %arg1[%c3_80, %c1_81, %c0_82, %c0_83, %c0_84] : memref<4x3x1x16x16xf32, #tpu.memory_space<vmem>>, vector<1x1x1x16x16xf32>
    %64 = vector.shape_cast %63 : vector<1x1x1x16x16xf32> to vector<16x16xf32>
    %c1_85 = arith.constant 1 : index
    %c0_86 = arith.constant 0 : index
    %c0_87 = arith.constant 0 : index
    %65 = vector.load %arg2[%c1_85, %c0_86, %c0_87] : memref<2x128x16xf32, #tpu.memory_space<vmem>>, vector<1x128x16xf32>
    %66 = vector.shape_cast %65 : vector<1x128x16xf32> to vector<128x16xf32>
    %cst_88 = arith.constant dense<0.000000e+00> : vector<128x16xf32>
    %67 = tpu.matmul %66, %64, %cst_88 {dimension_numbers = #tpu.dot_dimension_numbers<[1], [0], [0], [1], [0, 0, 1, 1], [], []>} : vector<128x16xf32>, vector<16x16xf32>, vector<128x16xf32> -> vector<128x16xf32>
    %68 = arith.addf %62, %67 : vector<128x16xf32>
    %c1_89 = arith.constant 1 : index
    %c0_90 = arith.constant 0 : index
    %c0_91 = arith.constant 0 : index
    %69 = vector.load %arg3[%c1_89, %c0_90, %c0_91] : memref<2x16x128xf32, #tpu.memory_space<vmem>>, vector<1x16x128xf32>
    %70 = vector.shape_cast %69 : vector<1x16x128xf32> to vector<16x128xf32>
    %cst_92 = arith.constant dense<0.000000e+00> : vector<128x128xf32>
    %71 = tpu.matmul %68, %70, %cst_92 {dimension_numbers = #tpu.dot_dimension_numbers<[1], [0], [0], [1], [0, 0, 1, 1], [], []>} : vector<128x16xf32>, vector<16x128xf32>, vector<128x128xf32> -> vector<128x128xf32>
    %72 = arith.addf %55, %71 : vector<128x128xf32>
    %c0_93 = arith.constant 0 : index
    %c1_94 = arith.constant 1 : index
    %c0_95 = arith.constant 0 : index
    %c0_96 = arith.constant 0 : index
    %73 = vector.load %arg4[%c0_93, %c1_94, %c0_95, %c0_96] : memref<1x3x128x128xf32, #tpu.memory_space<vmem>>, vector<1x1x128x128xf32>
    %74 = vector.shape_cast %73 : vector<1x1x128x128xf32> to vector<128x128xf32>
    %75 = vector.shape_cast %72 : vector<128x128xf32> to vector<1x1x128x128xf32>
    tpu.vector_store %arg4[%c0_93, %c1_94, %c0_95, %c0_96], %75 {strides = array<i32>} : memref<1x3x128x128xf32, #tpu.memory_space<vmem>>, vector<1x1x128x128xf32>,
    %cst_97 = arith.constant 0.000000e+00 : f32
    %76 = vector.broadcast %cst_97 : f32 to vector<128x128xf32>
    %cst_98 = arith.constant 0.000000e+00 : f32
    %77 = vector.broadcast %cst_98 : f32 to vector<128x16xf32>
    %c0_99 = arith.constant 0 : index
    %c2_100 = arith.constant 2 : index
    %c0_101 = arith.constant 0 : index
    %c0_102 = arith.constant 0 : index
    %c0_103 = arith.constant 0 : index
    %78 = vector.load %arg1[%c0_99, %c2_100, %c0_101, %c0_102, %c0_103] : memref<4x3x1x16x16xf32, #tpu.memory_space<vmem>>, vector<1x1x1x16x16xf32>
    %79 = vector.shape_cast %78 : vector<1x1x1x16x16xf32> to vector<16x16xf32>
    %c0_104 = arith.constant 0 : index
    %c0_105 = arith.constant 0 : index
    %c0_106 = arith.constant 0 : index
    %80 = vector.load %arg2[%c0_104, %c0_105, %c0_106] : memref<2x128x16xf32, #tpu.memory_space<vmem>>, vector<1x128x16xf32>
    %81 = vector.shape_cast %80 : vector<1x128x16xf32> to vector<128x16xf32>
    %cst_107 = arith.constant dense<0.000000e+00> : vector<128x16xf32>
    %82 = tpu.matmul %81, %79, %cst_107 {dimension_numbers = #tpu.dot_dimension_numbers<[1], [0], [0], [1], [0, 0, 1, 1], [], []>} : vector<128x16xf32>, vector<16x16xf32>, vector<128x16xf32> -> vector<128x16xf32>
    %83 = arith.addf %77, %82 : vector<128x16xf32>
    %c2_108 = arith.constant 2 : index
    %c2_109 = arith.constant 2 : index
    %c0_110 = arith.constant 0 : index
    %c0_111 = arith.constant 0 : index
    %c0_112 = arith.constant 0 : index
    %84 = vector.load %arg1[%c2_108, %c2_109, %c0_110, %c0_111, %c0_112] : memref<4x3x1x16x16xf32, #tpu.memory_space<vmem>>, vector<1x1x1x16x16xf32>
    %85 = vector.shape_cast %84 : vector<1x1x1x16x16xf32> to vector<16x16xf32>
    %c1_113 = arith.constant 1 : index
    %c0_114 = arith.constant 0 : index
    %c0_115 = arith.constant 0 : index
    %86 = vector.load %arg2[%c1_113, %c0_114, %c0_115] : memref<2x128x16xf32, #tpu.memory_space<vmem>>, vector<1x128x16xf32>
    %87 = vector.shape_cast %86 : vector<1x128x16xf32> to vector<128x16xf32>
    %cst_116 = arith.constant dense<0.000000e+00> : vector<128x16xf32>
    %88 = tpu.matmul %87, %85, %cst_116 {dimension_numbers = #tpu.dot_dimension_numbers<[1], [0], [0], [1], [0, 0, 1, 1], [], []>} : vector<128x16xf32>, vector<16x16xf32>, vector<128x16xf32> -> vector<128x16xf32>
    %89 = arith.addf %83, %88 : vector<128x16xf32>
    %c0_117 = arith.constant 0 : index
    %c0_118 = arith.constant 0 : index
    %c0_119 = arith.constant 0 : index
    %90 = vector.load %arg3[%c0_117, %c0_118, %c0_119] : memref<2x16x128xf32, #tpu.memory_space<vmem>>, vector<1x16x128xf32>
    %91 = vector.shape_cast %90 : vector<1x16x128xf32> to vector<16x128xf32>
    %cst_120 = arith.constant dense<0.000000e+00> : vector<128x128xf32>
    %92 = tpu.matmul %89, %91, %cst_120 {dimension_numbers = #tpu.dot_dimension_numbers<[1], [0], [0], [1], [0, 0, 1, 1], [], []>} : vector<128x16xf32>, vector<16x128xf32>, vector<128x128xf32> -> vector<128x128xf32>
    %93 = arith.addf %76, %92 : vector<128x128xf32>
    %cst_121 = arith.constant 0.000000e+00 : f32
    %94 = vector.broadcast %cst_121 : f32 to vector<128x16xf32>
    %c1_122 = arith.constant 1 : index
    %c2_123 = arith.constant 2 : index
    %c0_124 = arith.constant 0 : index
    %c0_125 = arith.constant 0 : index
    %c0_126 = arith.constant 0 : index
    %95 = vector.load %arg1[%c1_122, %c2_123, %c0_124, %c0_125, %c0_126] : memref<4x3x1x16x16xf32, #tpu.memory_space<vmem>>, vector<1x1x1x16x16xf32>
    %96 = vector.shape_cast %95 : vector<1x1x1x16x16xf32> to vector<16x16xf32>
    %c0_127 = arith.constant 0 : index
    %c0_128 = arith.constant 0 : index
    %c0_129 = arith.constant 0 : index
    %97 = vector.load %arg2[%c0_127, %c0_128, %c0_129] : memref<2x128x16xf32, #tpu.memory_space<vmem>>, vector<1x128x16xf32>
    %98 = vector.shape_cast %97 : vector<1x128x16xf32> to vector<128x16xf32>
    %cst_130 = arith.constant dense<0.000000e+00> : vector<128x16xf32>
    %99 = tpu.matmul %98, %96, %cst_130 {dimension_numbers = #tpu.dot_dimension_numbers<[1], [0], [0], [1], [0, 0, 1, 1], [], []>} : vector<128x16xf32>, vector<16x16xf32>, vector<128x16xf32> -> vector<128x16xf32>
    %100 = arith.addf %94, %99 : vector<128x16xf32>
    %c3_131 = arith.constant 3 : index
    %c2_132 = arith.constant 2 : index
    %c0_133 = arith.constant 0 : index
    %c0_134 = arith.constant 0 : index
    %c0_135 = arith.constant 0 : index
    %101 = vector.load %arg1[%c3_131, %c2_132, %c0_133, %c0_134, %c0_135] : memref<4x3x1x16x16xf32, #tpu.memory_space<vmem>>, vector<1x1x1x16x16xf32>
    %102 = vector.shape_cast %101 : vector<1x1x1x16x16xf32> to vector<16x16xf32>
    %c1_136 = arith.constant 1 : index
    %c0_137 = arith.constant 0 : index
    %c0_138 = arith.constant 0 : index
    %103 = vector.load %arg2[%c1_136, %c0_137, %c0_138] : memref<2x128x16xf32, #tpu.memory_space<vmem>>, vector<1x128x16xf32>
    %104 = vector.shape_cast %103 : vector<1x128x16xf32> to vector<128x16xf32>
    %cst_139 = arith.constant dense<0.000000e+00> : vector<128x16xf32>
    %105 = tpu.matmul %104, %102, %cst_139 {dimension_numbers = #tpu.dot_dimension_numbers<[1], [0], [0], [1], [0, 0, 1, 1], [], []>} : vector<128x16xf32>, vector<16x16xf32>, vector<128x16xf32> -> vector<128x16xf32>
    %106 = arith.addf %100, %105 : vector<128x16xf32>
    %c1_140 = arith.constant 1 : index
    %c0_141 = arith.constant 0 : index
    %c0_142 = arith.constant 0 : index
    %107 = vector.load %arg3[%c1_140, %c0_141, %c0_142] : memref<2x16x128xf32, #tpu.memory_space<vmem>>, vector<1x16x128xf32>
    %108 = vector.shape_cast %107 : vector<1x16x128xf32> to vector<16x128xf32>
    %cst_143 = arith.constant dense<0.000000e+00> : vector<128x128xf32>
    %109 = tpu.matmul %106, %108, %cst_143 {dimension_numbers = #tpu.dot_dimension_numbers<[1], [0], [0], [1], [0, 0, 1, 1], [], []>} : vector<128x16xf32>, vector<16x128xf32>, vector<128x128xf32> -> vector<128x128xf32>
    %110 = arith.addf %93, %109 : vector<128x128xf32>
    %c0_144 = arith.constant 0 : index
    %c2_145 = arith.constant 2 : index
    %c0_146 = arith.constant 0 : index
    %c0_147 = arith.constant 0 : index
    %111 = vector.load %arg4[%c0_144, %c2_145, %c0_146, %c0_147] : memref<1x3x128x128xf32, #tpu.memory_space<vmem>>, vector<1x1x128x128xf32>
    %112 = vector.shape_cast %111 : vector<1x1x128x128xf32> to vector<128x128xf32>
    %113 = vector.shape_cast %110 : vector<128x128xf32> to vector<1x1x128x128xf32>
    tpu.vector_store %arg4[%c0_144, %c2_145, %c0_146, %c0_147], %113 {strides = array<i32>} : memref<1x3x128x128xf32, #tpu.memory_space<vmem>>, vector<1x1x128x128xf32>,
    return
  }
  func.func @transform_0(%arg0: i32) -> (i32, i32, i32, i32, i32) {
    %c0_i32 = arith.constant 0 : i32
    %c0_i32_0 = arith.constant 0 : i32
    %c0_i32_1 = arith.constant 0 : i32
    %c0_i32_2 = arith.constant 0 : i32
    %c0_i32_3 = arith.constant 0 : i32
    return %c0_i32, %c0_i32_0, %arg0, %c0_i32_1, %c0_i32_2 : i32, i32, i32, i32, i32
  }
  func.func @transform_1(%arg0: i32) -> (i32, i32, i32) {
    %c0_i32 = arith.constant 0 : i32
    %c0_i32_0 = arith.constant 0 : i32
    %c0_i32_1 = arith.constant 0 : i32
    %c0_i32_2 = arith.constant 0 : i32
    return %c0_i32, %c0_i32_0, %c0_i32_1 : i32, i32, i32
  }
  func.func @transform_2(%arg0: i32) -> (i32, i32, i32) {
    %c0_i32 = arith.constant 0 : i32
    %c0_i32_0 = arith.constant 0 : i32
    %c0_i32_1 = arith.constant 0 : i32
    %c0_i32_2 = arith.constant 0 : i32
    return %c0_i32, %c0_i32_0, %c0_i32_1 : i32, i32, i32
  }
  func.func @transform_3(%arg0: i32) -> (i32, i32, i32, i32) {
    %c0_i32 = arith.constant 0 : i32
    %c0_i32_0 = arith.constant 0 : i32
    %c0_i32_1 = arith.constant 0 : i32
    %c0_i32_2 = arith.constant 0 : i32
    return %arg0, %c0_i32, %c0_i32_0, %c0_i32_1 : i32, i32, i32, i32
  }
}

</mosaic_0001>

<bundles_post_ra>
// kernel: _forward.2
= control target key start
LH: loop header
LB: loop body
LE: loop exit
PB: predicated region body
PF: predicated region fallthrough
CT: control target
= control target key end

     0   :  { %s1064_s21 = smov 0   ;;  %s1066_s22 = smov 0   ;;  %s1212_s0 = inlined_call_operand.vmem [shape: bf16[16,512], index: 0, kind: input, shape index: {}]   ;;  %s1213_s1 = inlined_call_operand.vmem [shape: bf16[32,16], index: 1, kind: input, shape index: {}]   ;;  %s1214_s2 = inlined_call_operand.vmem [shape: f32[32,1], index: 2, kind: input, shape index: {}]   ;;  %s1215_s3 = inlined_call_operand.vmem [shape: f32[8,1], index: 3, kind: input, shape index: {}]   ;;  %s1216_s4 = inlined_call_operand.vmem [shape: f32[8,1], index: 4, kind: input, shape index: {}]   ;;  %s1217_s5 = inlined_call_operand.vmem [shape: f32[32,512], index: 5, kind: output, shape index: {0}]   ;;  %s1218_s6 = inlined_call_operand.vmem [shape: f32[4,3,512], index: 6, kind: output, shape index: {1}]  }
   0x1   :  { %s1068_s23 = smov 0  }
   0x2 LB: > { %s29_s24 = sadd.s32 1, %s1020_s22  ;;  %p926_p0 = scmp.ge.s32.totalorder %s1024_s23, 1  ;;  %s1024_s23 = sphi %s1068_s23, %s17_s23   ;;  %s1020_s22 = sphi %s1066_s22, %s1220_s22   ;;  %s1016_s21 = sphi %s1064_s21, %s1219_s21  }
   0x3   : > { %p31_p1 = scmp.ge.s32.totalorder %s29_s24, 2  ;;  %p240_p2 = scmp.lt.s32.totalorder %s1024_s23, 3 }
   0x5   : > { %s1222_s24 = smov (%p31_p1, %s29_s24), 0  ;;  %p241_p3 = pnand %p926_p0, %p240_p2 }
   0x6   : > { %p307_p4 = scmp.eq.s32.totalorder (!%p241_p3), %s1016_s21, 0 }
   0x7   : > { %244 = sbr.rel (%p241_p3) target bundleno = 599 (0x257), region = 40 }
   0xe   : > { %312 = sbr.rel (!%p307_p4) target bundleno = 21 (0x15), region = 44  ;;  %vm313_vm0 = vcmask (%p307_p4), 7168   ;;  %v1026_v0 = vmov (%p307_p4), 0.0  }
   0xf   : > { %314 = vst.msk [vmem:[#allocation3] sm:$0xff] (%p307_p4), %vm313_vm0, %v1026_v0  ;;  %315 = vst.msk [vmem:[#allocation3 + $0x8] sm:$0xff] (%p307_p4), %vm313_vm0, %v1026_v0 }
  0x10   : > { %316 = vst.msk [vmem:[#allocation3 + $0x10] sm:$0xff] (%p307_p4), %vm313_vm0, %v1026_v0  ;;  %317 = vst.msk [vmem:[#allocation3 + $0x18] sm:$0xff] (%p307_p4), %vm313_vm0, %v1026_v0 }
  0x11   : > { %318 = vst.msk [vmem:[#allocation4] sm:$0xff] (%p307_p4), %vm313_vm0, %v1026_v0  ;;  %319 = vst.msk [vmem:[#allocation4 + $0x8] sm:$0xff] (%p307_p4), %vm313_vm0, %v1026_v0 }
  0x12   : > { %320 = vst.msk [vmem:[#allocation4 + $0x10] sm:$0xff] (%p307_p4), %vm313_vm0, %v1026_v0  ;;  %321 = vst.msk [vmem:[#allocation4 + $0x18] sm:$0xff] (%p307_p4), %vm313_vm0, %v1026_v0 }
  0x15 PF: > { %p928_p5 = scmp.ne.s32.totalorder %s1016_s21, 0 }
  0x16   : > { %v982_v1 = vld [vmem:[%s1212_s0 + $0x4] ss:$16 sps:$4 sm:$0xff] (!%p928_p5)   ;;  %v984_v2 = vld [vmem:[%s1212_s0 + $0xc] ss:$16 sps:$4 sm:$0xff] (!%p928_p5)   ;;  %v1027_v3 = vmov (!%p928_p5), 0   ;;  %vm387_vm1 = vcmask (!%p928_p5), 130048  }
  0x17   : > { %324 = sbr.rel (%p928_p5) target bundleno = 412 (0x19c), region = 48  ;;  %426 = vmatprep.mubr.bf16.mxu0 (!%p928_p5), %v1027_v3  ;;  %479 = vmatprep.mubr.bf16.mxu1 (!%p928_p5), %v1027_v3  ;;  %v986_v4 = vld [vmem:[%s1212_s0] ss:$16 sps:$4 sm:$0xff] (!%p928_p5)   ;;  %v987_v5 = vld [vmem:[%s1212_s0 + $0x8] ss:$16 sps:$4 sm:$0xff] (!%p928_p5)   ;;  %vm548_vm2 = vcmask (!%p928_p5), 7168  }
  0x18   : > { %394 = vmatprep.subr.bf16.mxu0 (!%p928_p5), %v982_v1  ;;  %980 = vset.pattern.permute.xlu0 (!%p928_p5), %v1027_v3  ;;  %v988_v6 = vld [vmem:[%s1213_s1] sm:$0xff] (!%p928_p5)   ;;  %v335_v8 = vld [vmem:[%s1214_s2 + $0x10] sm:$0xff] (!%p928_p5)  ;;  %v334_v9 = vld [vmem:[%s1214_s2 + $0x8] sm:$0xff] (!%p928_p5) }
  0x19   : > { %447 = vmatprep.subr.bf16.mxu1 (!%p928_p5), %v984_v2  ;;  %981 = vset.pattern.permute.xlu1 (!%p928_p5), %v1027_v3  ;;  %v333_v7 = vld [vmem:[%s1214_s2] sm:$0xff] (!%p928_p5)  ;;  %v336_v10 = vld [vmem:[%s1214_s2 + $0x18] sm:$0xff] (!%p928_p5)  ;;  %v989_v11 = vld [vmem:[%s1213_s1 + $0x8] sm:$0xff] (!%p928_p5)  }
  0x1a   : > { %395 = vmatpush1.bf16.msra.mxu0 (!%p928_p5), %v986_v4  ;;  %448 = vmatpush1.bf16.msra.mxu1 (!%p928_p5), %v987_v5 }
  0x1b   : > { %339 = vperm.xlu0 (!%p928_p5), %980, %v333_v7   ;;  %349 = vperm.xlu1 (!%p928_p5), %981, %v335_v8  }
  0x1d   : > { %935 = vmatmul.mubr.msk.bf16.vlgmr.msra.gmra.mrb[0].mxu0 (!%p928_p5), %vm387_vm1, %v988_v6  ;;  %937 = vmatmul.mubr.msk.bf16.vlgmr.msra.gmra.mrb[0].mxu1 (!%p928_p5), %vm387_vm1, %v988_v6 }
  0x1e   : > { %436 = vmatprep.mubr.bf16.mxu0 %v1027_v3  ;;  %489 = vmatprep.mubr.bf16.mxu1 %v1027_v3 }
  0x1f   : > { %344 = vperm.xlu0 %980, %v334_v9   ;;  %354 = vperm.xlu1 %981, %v336_v10  }
  0x25   : > { %936 = vmatmul.mubr.msk.bf16.gmra.mrb[4].mxu0 %vm387_vm1, %v989_v11  ;;  %938 = vmatmul.mubr.msk.bf16.gmra.mrb[4].mxu1 %vm387_vm1, %v989_v11 }
  0x9a   : > { %v340_v12 = vpop.permute.xlu0 %339  ;;  %v350_v14 = vpop.permute.xlu1 %349 }
  0x9e   : > { %v345_v13 = vpop.permute.xlu0 %344  ;;  %v355_v39 = vpop.permute.xlu1 %354 }
  0xf0   : > { %v428_v15 = vpop.f32.mrb[0].mxu0  ;;  %v481_v16 = vpop.f32.mrb[0].mxu1 }
  0xf1   : > { %v429_v17 = vadd.f32 %v428_v15, %v340_v12  ;;  %v482_v18 = vadd.f32 %v481_v16, %v340_v12  ;;  %v430_v19 = vpop.f32.mrb[1].mxu0  ;;  %v483_v20 = vpop.f32.mrb[1].mxu1 }
  0xf2   : > { %v431_v21 = vadd.f32 %v430_v19, %v340_v12  ;;  %v484_v22 = vadd.f32 %v483_v20, %v340_v12  ;;  %v432_v23 = vpop.f32.mrb[2].mxu0  ;;  %v485_v24 = vpop.f32.mrb[2].mxu1 }
  0xf3   : > { %504 = vst [vmem:[#allocation2] sm:$0xff] %v429_v17  ;;  %v557_v25 = vmul.f32 %v429_v17, %v429_v17  ;;  %506 = vst [vmem:[#allocation2 + $0x10] sm:$0xff] %v482_v18  ;;  %v433_v26 = vadd.f32 %v432_v23, %v345_v13  ;;  %v486_v27 = vadd.f32 %v485_v24, %v345_v13  ;;  %v434_v28 = vpop.f32.mrb[3].mxu0  ;;  %v487_v29 = vpop.f32.mrb[3].mxu1  ;;  %v520_v24 = vld [vmem:[#allocation3] sm:$0xff] }
  0xf4   : > { %505 = vst [vmem:[#allocation2 + $0x8] sm:$0xff] %v431_v21  ;;  %v524_v30 = vadd.f32 %v431_v21, %v429_v17  ;;  %v558_v31 = vmul.f32 %v431_v21, %v431_v21  ;;  %507 = vst [vmem:[#allocation2 + $0x18] sm:$0xff] %v484_v22  ;;  %v435_v32 = vadd.f32 %v434_v28, %v345_v13 }
  0xf5   : > { %v488_v33 = vadd.f32 %v487_v29, %v345_v13  ;;  %508 = vst [vmem:[#allocation2 + $0x20] sm:$0xff] %v433_v26  ;;  %v561_v34 = vmul.f32 %v433_v26, %v433_v26  ;;  %510 = vst [vmem:[#allocation2 + $0x30] sm:$0xff] %v486_v27  ;;  %v559_v38 = vmul.f32 %v482_v18, %v482_v18 }
  0xf6   : > { %509 = vst [vmem:[#allocation2 + $0x28] sm:$0xff] %v435_v32  ;;  %v529_v35 = vadd.f32 %v435_v32, %v433_v26  ;;  %v562_v36 = vmul.f32 %v435_v32, %v435_v32  ;;  %v525_v37 = vadd.f32 %v524_v30, %v482_v18  ;;  %v573_v40 = vadd.f32 %v558_v31, %v557_v25  ;;  %v521_v26 = vld [vmem:[#allocation3 + $0x8] sm:$0xff]  ;;  %v553_v31 = vld [vmem:[#allocation4] sm:$0xff] }
  0xf7   : > { %511 = vst [vmem:[#allocation2 + $0x38] sm:$0xff] %v488_v33  ;;  %v563_v41 = vmul.f32 %v486_v27, %v486_v27  ;;  %v560_v51 = vmul.f32 %v484_v22, %v484_v22  ;;  %v564_v0 = vmul.f32 %v488_v33, %v488_v33  ;;  %v554_v30 = vld [vmem:[#allocation4 + $0x8] sm:$0xff] }
  0xf8   : > { %v438_v42 = vpop.f32.mrb[4].mxu0  ;;  %v491_v43 = vpop.f32.mrb[4].mxu1  ;;  %v526_v44 = vadd.f32 %v525_v37, %v484_v22  ;;  %v530_v45 = vadd.f32 %v529_v35, %v486_v27  ;;  %v578_v46 = vadd.f32 %v562_v36, %v561_v34  ;;  %v574_v52 = vadd.f32 %v573_v40, %v559_v38  ;;  %v522_v36 = vld [vmem:[#allocation3 + $0x10] sm:$0xff] }
  0xf9   : > { %v439_v47 = vadd.f32 %v438_v42, %v350_v14  ;;  %v492_v48 = vadd.f32 %v491_v43, %v350_v14  ;;  %v440_v49 = vpop.f32.mrb[5].mxu0  ;;  %v493_v50 = vpop.f32.mrb[5].mxu1  ;;  %v555_v38 = vld [vmem:[#allocation4 + $0x10] sm:$0xff] }
  0xfa   : > { %v441_v53 = vadd.f32 %v440_v49, %v350_v14  ;;  %v494_v54 = vadd.f32 %v493_v50, %v350_v14  ;;  %v442_v55 = vpop.f32.mrb[6].mxu0  ;;  %v495_v56 = vpop.f32.mrb[6].mxu1  ;;  %527 = vadd.xlane.f32.xlu0 %v526_v44  ;;  %v531_v57 = vadd.f32 %v530_v45, %v488_v33  ;;  %v579_v58 = vadd.f32 %v578_v46, %v563_v41  ;;  %v523_v41 = vld [vmem:[#allocation3 + $0x18] sm:$0xff] }
  0xfb   : > { %512 = vst [vmem:[#allocation2 + $0x40] sm:$0xff] %v439_v47  ;;  %v565_v59 = vmul.f32 %v439_v47, %v439_v47  ;;  %514 = vst [vmem:[#allocation2 + $0x50] sm:$0xff] %v492_v48  ;;  %v443_v60 = vadd.f32 %v442_v55, %v355_v39  ;;  %v496_v61 = vadd.f32 %v495_v56, %v355_v39  ;;  %v444_v62 = vpop.f32.mrb[7].mxu0  ;;  %v497_v63 = vpop.f32.mrb[7].mxu1  ;;  %v556_v45 = vld [vmem:[#allocation4 + $0x18] sm:$0xff] }
  0xfc   : > { %513 = vst [vmem:[#allocation2 + $0x48] sm:$0xff] %v441_v53  ;;  %v534_v1 = vadd.f32 %v441_v53, %v439_v47  ;;  %v566_v2 = vmul.f32 %v441_v53, %v441_v53  ;;  %515 = vst [vmem:[#allocation2 + $0x58] sm:$0xff] %v494_v54  ;;  %v445_v3 = vadd.f32 %v444_v62, %v355_v39  ;;  %532 = vadd.xlane.f32.xlu1 %v531_v57 }
  0xfd   : > { %v498_v4 = vadd.f32 %v497_v63, %v355_v39  ;;  %516 = vst [vmem:[#allocation2 + $0x60] sm:$0xff] %v443_v60  ;;  %v569_v5 = vmul.f32 %v443_v60, %v443_v60  ;;  %518 = vst [vmem:[#allocation2 + $0x70] sm:$0xff] %v496_v61  ;;  %v580_v6 = vadd.f32 %v579_v58, %v564_v0 }
  0xfe   : > { %v575_v7 = vadd.f32 %v574_v52, %v560_v51  ;;  %517 = vst [vmem:[#allocation2 + $0x68] sm:$0xff] %v445_v3  ;;  %v539_v8 = vadd.f32 %v445_v3, %v443_v60  ;;  %v570_v9 = vmul.f32 %v445_v3, %v445_v3  ;;  %v535_v10 = vadd.f32 %v534_v1, %v492_v48 }
  0xff   : > { %519 = vst [vmem:[#allocation2 + $0x78] sm:$0xff] %v498_v4  ;;  %v567_v11 = vmul.f32 %v492_v48, %v492_v48  ;;  %581 = vadd.xlane.f32.xlu0 %v580_v6  ;;  %v583_v12 = vadd.f32 %v566_v2, %v565_v59  ;;  %v571_v13 = vmul.f32 %v496_v61, %v496_v61 }
 0x100   : > { %576 = vadd.xlane.f32.xlu1 %v575_v7  ;;  %v536_v14 = vadd.f32 %v535_v10, %v494_v54  ;;  %v540_v15 = vadd.f32 %v539_v8, %v496_v61  ;;  %v588_v16 = vadd.f32 %v570_v9, %v569_v5  ;;  %v568_v17 = vmul.f32 %v494_v54, %v494_v54 }
 0x101   : > { %v584_v18 = vadd.f32 %v583_v12, %v567_v11  ;;  %v572_v20 = vmul.f32 %v498_v4, %v498_v4 }
 0x102   : > { %v541_v19 = vadd.f32 %v540_v15, %v498_v4  ;;  %v589_v21 = vadd.f32 %v588_v16, %v571_v13 }
 0x103   : > { %537 = vadd.xlane.f32.xlu0 %v536_v14  ;;  %v585_v22 = vadd.f32 %v584_v18, %v568_v17 }
 0x104   : > { %v590_v23 = vadd.f32 %v589_v21, %v572_v20 }
 0x105   : > { %586 = vadd.xlane.f32.xlu1 %v585_v22 }
 0x107   : > { %542 = vadd.xlane.f32.xlu0 %v541_v19 }
 0x10b   : > { %591 = vadd.xlane.f32.xlu0 %v590_v23 }
 0x187   : > { %v528_v25 = vpop.xlane.xlu0 %527 }
 0x188   : > { %v544_v27 = vadd.f32 %v528_v25, %v520_v24 }
 0x189   : > { %v533_v28 = vpop.xlane.xlu1 %532 }
 0x18a   : > { %549 = vst.msk [vmem:[#allocation3] sm:$0xff] %vm548_vm2, %v544_v27  ;;  %v545_v29 = vadd.f32 %v533_v28, %v521_v26 }
 0x18c   : > { %550 = vst.msk [vmem:[#allocation3 + $0x8] sm:$0xff] %vm548_vm2, %v545_v29  ;;  %v582_v32 = vpop.xlane.xlu0 %581 }
 0x18d   : > { %v594_v33 = vadd.f32 %v582_v32, %v554_v30  ;;  %v577_v34 = vpop.xlane.xlu1 %576 }
 0x18e   : > { %v593_v35 = vadd.f32 %v577_v34, %v553_v31 }
 0x18f   : > { %598 = vst.msk [vmem:[#allocation4 + $0x8] sm:$0xff] %vm548_vm2, %v594_v33 }
 0x190   : > { %597 = vst.msk [vmem:[#allocation4] sm:$0xff] %vm548_vm2, %v593_v35  ;;  %v538_v37 = vpop.xlane.xlu0 %537 }
 0x191   : > { %v546_v39 = vadd.f32 %v538_v37, %v522_v36 }
 0x192   : > { %v587_v40 = vpop.xlane.xlu1 %586 }
 0x193   : > { %551 = vst.msk [vmem:[#allocation3 + $0x10] sm:$0xff] %vm548_vm2, %v546_v39  ;;  %v595_v42 = vadd.f32 %v587_v40, %v555_v38 }
 0x194   : > { %v543_v43 = vpop.xlane.xlu0 %542 }
 0x195   : > { %599 = vst.msk [vmem:[#allocation4 + $0x10] sm:$0xff] %vm548_vm2, %v595_v42  ;;  %v547_v44 = vadd.f32 %v543_v43, %v523_v41 }
 0x197   : > { %552 = vst.msk [vmem:[#allocation3 + $0x18] sm:$0xff] %vm548_vm2, %v547_v44 }
 0x198   : > { %v592_v46 = vpop.xlane.xlu0 %591 }
 0x199   : > { %v596_v47 = vadd.f32 %v592_v46, %v556_v45 }
 0x19b   : > { %600 = vst.msk [vmem:[#allocation4 + $0x18] sm:$0xff] %vm548_vm2, %v596_v47 }
 0x19c PF: > { %p939_p6 = scmp.ne.s32.totalorder %s1016_s21, 1 }
 0x19d   : > { %v608_v48 = vld [vmem:[#allocation3] sm:$0xff] (!%p939_p6)  ;;  %v609_v49 = vld [vmem:[#allocation3 + $0x8] sm:$0xff] (!%p939_p6)  ;;  %v611_v50 = vld [vmem:[#allocation3 + $0x10] sm:$0xff] (!%p939_p6)  ;;  %v1028_v51 = vmov (!%p939_p6), 0   ;;  %vm631_vm3 = vcmask (!%p939_p6), 7168  }
 0x19e   : > { %604 = sbr.rel (%p939_p6) target bundleno = 599 (0x257), region = 52  ;;  %991 = vset.pattern.permute.xlu1 (!%p939_p6), %v1028_v51  ;;  %990 = vset.pattern.permute.xlu0 (!%p939_p6), %v1028_v51  ;;  %v610_v52 = vadd.f32 (!%p939_p6), %v609_v49, %v608_v48  ;;  %v615_v53 = vld [vmem:[#allocation4] sm:$0xff] (!%p939_p6)  ;;  %v616_v54 = vld [vmem:[#allocation4 + $0x8] sm:$0xff] (!%p939_p6)  ;;  %v613_v55 = vld [vmem:[#allocation3 + $0x18] sm:$0xff] (!%p939_p6) }
 0x19f   : > { %v617_v56 = vadd.f32 (!%p939_p6), %v616_v54, %v615_v53  ;;  %v618_v57 = vld [vmem:[#allocation4 + $0x10] sm:$0xff] (!%p939_p6)  ;;  %v627_v5 = vld [vmem:[%s1215_s3] sm:$0xff] (!%p939_p6)  ;;  %v642_v13 = vld [vmem:[#allocation2 + $0x8] sm:$0xff] (!%p939_p6) }
 0x1a0   : > { %v612_v58 = vadd.f32 (!%p939_p6), %v611_v50, %v610_v52  ;;  %v633_v8 = vld [vmem:[%s1216_s4] sm:$0xff] (!%p939_p6)  ;;  %v643_v14 = vld [vmem:[#allocation2 + $0x10] sm:$0xff] (!%p939_p6)  ;;  %v644_v15 = vld [vmem:[#allocation2 + $0x18] sm:$0xff] (!%p939_p6) }
 0x1a1   : > { %v619_v60 = vadd.f32 (!%p939_p6), %v618_v57, %v617_v56  ;;  %v641_v12 = vld [vmem:[#allocation2] sm:$0xff] (!%p939_p6)  ;;  %v650_v17 = vcombine.low (!%p939_p6), %v643_v14, %v644_v15  ;;  %v684_v19 = vld [vmem:[#allocation2 + $0x28] sm:$0xff] (!%p939_p6)  ;;  %v685_v20 = vld [vmem:[#allocation2 + $0x30] sm:$0xff] (!%p939_p6) }
 0x1a2   : > { %v620_v59 = vld [vmem:[#allocation4 + $0x18] sm:$0xff] (!%p939_p6)  ;;  %v614_v61 = vadd.f32 (!%p939_p6), %v613_v55, %v612_v58  ;;  %v649_v16 = vcombine.low (!%p939_p6), %v641_v12, %v642_v13  ;;  %v683_v18 = vld [vmem:[#allocation2 + $0x20] sm:$0xff] (!%p939_p6)  ;;  %v770_v26 = vld [vmem:[#allocation2 + $0x68] sm:$0xff] (!%p939_p6) }
 0x1a3   : > { %v621_v62 = vadd.f32 (!%p939_p6), %v620_v59, %v619_v60  ;;  %654 = vst [vmem:[%s1218_s6 + $0x8] sm:$0x77] (!%p939_p6), %v650_v17  ;;  %v686_v21 = vld [vmem:[#allocation2 + $0x38] sm:$0xff] (!%p939_p6)  ;;  %v691_v22 = vcombine.low (!%p939_p6), %v683_v18, %v684_v19  ;;  %v769_v25 = vld [vmem:[#allocation2 + $0x60] sm:$0xff] (!%p939_p6)  ;;  %v771_v27 = vld [vmem:[#allocation2 + $0x70] sm:$0xff] (!%p939_p6) }
 0x1a4   : > { %v622_v63 = vmul.f32 (!%p939_p6), 0.00048828125, %v614_v61  ;;  %653 = vst [vmem:[%s1218_s6] sm:$0x77] (!%p939_p6), %v649_v16  ;;  %v692_v24 = vcombine.low (!%p939_p6), %v685_v20, %v686_v21  ;;  %v772_v28 = vld [vmem:[#allocation2 + $0x78] sm:$0xff] (!%p939_p6)  ;;  %v777_v29 = vcombine.low (!%p939_p6), %v769_v25, %v770_v26  ;;  %v726_v31 = vld [vmem:[#allocation2 + $0x40] sm:$0xff] (!%p939_p6)  ;;  %v727_v32 = vld [vmem:[#allocation2 + $0x48] sm:$0xff] (!%p939_p6) }
 0x1a5   : > { %v623_v0 = vmul.f32 0.00048828125, %v621_v62  ;;  %940 = vst [vmem:[%s1218_s6 + $0x10] sm:$0x77] %v691_v22  ;;  %v778_v30 = vcombine.low %v771_v27, %v772_v28  ;;  %v728_v33 = vld [vmem:[#allocation2 + $0x50] sm:$0xff]  ;;  %v729_v34 = vld [vmem:[#allocation2 + $0x58] sm:$0xff]  ;;  %v734_v35 = vcombine.low %v726_v31, %v727_v32 }
 0x1a6   : > { %v624_v1 = vmul.f32 %v622_v63, %v622_v63  ;;  %941 = vst [vmem:[%s1218_s6 + $0x18] sm:$0x77] %v692_v24  ;;  %944 = vst [vmem:[%s1218_s6 + $0x30] sm:$0x77] %v777_v29  ;;  %v735_v36 = vcombine.low %v728_v33, %v729_v34 }
 0x1a7   : > { %945 = vst [vmem:[%s1218_s6 + $0x38] sm:$0x77] %v778_v30  ;;  %942 = vst [vmem:[%s1218_s6 + $0x20] sm:$0x77] %v734_v35 }
 0x1a8   : > { %v625_v2 = vsub.f32 %v623_v0, %v624_v1  ;;  %943 = vst [vmem:[%s1218_s6 + $0x28] sm:$0x77] %v735_v36 }
 0x1aa   : > { %v626_v3 = vmax.f32 %v625_v2, 0.0 }
 0x1ac   : > { %v628_v4 = vadd.f32 1e-05, %v626_v3 }
 0x1ae   : > { %1000 = vrsqrt.f32 %v628_v4 }
 0x1b8   : > { %v1001_v6 = vpop.eup %1000 }
 0x1b9   : > { %v630_v7 = vmul.f32 %v1001_v6, %v627_v5 }
 0x1bb   : > { %632 = vst.msk [vmem:[#allocation5] sm:$0xff] %vm631_vm3, %v630_v7  ;;  %v634_v9 = vmul.f32 %v630_v7, %v622_v63 }
 0x1bd   : > { %v635_v10 = vsub.f32 %v633_v8, %v634_v9 }
 0x1bf   : > { %636 = vst.msk [vmem:[#allocation6] sm:$0xff] %vm631_vm3, %v635_v10 }
 0x1c2   : > { %v741_v11 = vld [vmem:[#allocation5] sm:$0xff] }
 0x1c3   : > { %744 = vperm.xlu1 %991, %v741_v11   ;;  %658 = vperm.xlu0 %990, %v741_v11  }
 0x1c6   : > { %v708_v23 = vld [vmem:[#allocation6] sm:$0xff] }
 0x1c7   : > { %787 = vperm.xlu1 %991, %v741_v11   ;;  %701 = vperm.xlu0 %990, %v741_v11  }
 0x1cb   : > { %711 = vperm.xlu1 %991, %v708_v23   ;;  %668 = vperm.xlu0 %990, %v708_v23  }
 0x1cf   : > { %797 = vperm.xlu1 %991, %v708_v23   ;;  %754 = vperm.xlu0 %990, %v708_v23  }
 0x242   : > { %v745_v37 = vpop.permute.xlu1 %744  ;;  %v659_v38 = vpop.permute.xlu0 %658 }
 0x243   : > { %v661_v41 = vmul.f32 %v659_v38, %v641_v12  ;;  %v662_v42 = vmul.f32 %v659_v38, %v642_v13  ;;  %v663_v43 = vmul.f32 %v659_v38, %v643_v14  ;;  %v664_v44 = vmul.f32 %v659_v38, %v644_v15 }
 0x244   : > { %v747_v45 = vmul.f32 %v745_v37, %v726_v31  ;;  %v748_v46 = vmul.f32 %v745_v37, %v727_v32  ;;  %v749_v47 = vmul.f32 %v745_v37, %v728_v33  ;;  %v750_v48 = vmul.f32 %v745_v37, %v729_v34 }
 0x246   : > { %v788_v39 = vpop.permute.xlu1 %787  ;;  %v702_v40 = vpop.permute.xlu0 %701 }
 0x247   : > { %v704_v49 = vmul.f32 %v702_v40, %v683_v18  ;;  %v705_v50 = vmul.f32 %v702_v40, %v684_v19  ;;  %v706_v51 = vmul.f32 %v702_v40, %v685_v20  ;;  %v707_v52 = vmul.f32 %v702_v40, %v686_v21 }
 0x248   : > { %v790_v55 = vmul.f32 %v788_v39, %v769_v25  ;;  %v791_v56 = vmul.f32 %v788_v39, %v770_v26  ;;  %v792_v57 = vmul.f32 %v788_v39, %v771_v27  ;;  %v793_v58 = vmul.f32 %v788_v39, %v772_v28 }
 0x24a   : > { %v712_v53 = vpop.permute.xlu1 %711  ;;  %v669_v54 = vpop.permute.xlu0 %668 }
 0x24b   : > { %v714_v59 = vadd.f32 %v712_v53, %v704_v49  ;;  %v715_v60 = vadd.f32 %v712_v53, %v705_v50  ;;  %v716_v61 = vadd.f32 %v712_v53, %v706_v51  ;;  %v717_v62 = vadd.f32 %v712_v53, %v707_v52 }
 0x24c   : > { %v671_v63 = vadd.f32 %v669_v54, %v661_v41  ;;  %v672_v0 = vadd.f32 %v669_v54, %v662_v42  ;;  %v673_v1 = vadd.f32 %v669_v54, %v663_v43  ;;  %v674_v2 = vadd.f32 %v669_v54, %v664_v44 }
 0x24d   : > { %v718_v3 = vmax.f32 %v714_v59, 0.0  ;;  %v719_v4 = vmax.f32 %v715_v60, 0.0  ;;  %v720_v5 = vmax.f32 %v716_v61, 0.0  ;;  %v721_v6 = vmax.f32 %v717_v62, 0.0 }
 0x24e   : > { %v675_v7 = vmax.f32 %v671_v63, 0.0  ;;  %v676_v8 = vmax.f32 %v672_v0, 0.0  ;;  %v677_v9 = vmax.f32 %v673_v1, 0.0  ;;  %v678_v10 = vmax.f32 %v674_v2, 0.0  ;;  %v798_v11 = vpop.permute.xlu1 %797  ;;  %v755_v12 = vpop.permute.xlu0 %754 }
 0x24f   : > { %722 = vst [vmem:[%s1217_s5 + $0x20] sm:$0xff] %v718_v3  ;;  %723 = vst [vmem:[%s1217_s5 + $0x28] sm:$0xff] %v719_v4  ;;  %v800_v13 = vadd.f32 %v798_v11, %v790_v55  ;;  %v801_v14 = vadd.f32 %v798_v11, %v791_v56  ;;  %v802_v15 = vadd.f32 %v798_v11, %v792_v57 }
 0x250   : > { %724 = vst [vmem:[%s1217_s5 + $0x30] sm:$0xff] %v720_v5  ;;  %725 = vst [vmem:[%s1217_s5 + $0x38] sm:$0xff] %v721_v6  ;;  %v803_v16 = vadd.f32 %v798_v11, %v793_v58  ;;  %v757_v17 = vadd.f32 %v755_v12, %v747_v45  ;;  %v758_v18 = vadd.f32 %v755_v12, %v748_v46 }
 0x251   : > { %679 = vst [vmem:[%s1217_s5] sm:$0xff] %v675_v7  ;;  %680 = vst [vmem:[%s1217_s5 + $0x8] sm:$0xff] %v676_v8  ;;  %v759_v19 = vadd.f32 %v755_v12, %v749_v47  ;;  %v760_v20 = vadd.f32 %v755_v12, %v750_v48  ;;  %v804_v21 = vmax.f32 %v800_v13, 0.0  ;;  %v805_v22 = vmax.f32 %v801_v14, 0.0 }
 0x252   : > { %681 = vst [vmem:[%s1217_s5 + $0x10] sm:$0xff] %v677_v9  ;;  %682 = vst [vmem:[%s1217_s5 + $0x18] sm:$0xff] %v678_v10  ;;  %v806_v23 = vmax.f32 %v802_v15, 0.0  ;;  %v807_v24 = vmax.f32 %v803_v16, 0.0  ;;  %v761_v25 = vmax.f32 %v757_v17, 0.0  ;;  %v762_v26 = vmax.f32 %v758_v18, 0.0 }
 0x253   : > { %v763_v27 = vmax.f32 %v759_v19, 0.0  ;;  %v764_v28 = vmax.f32 %v760_v20, 0.0  ;;  %808 = vst [vmem:[%s1217_s5 + $0x60] sm:$0xff] %v804_v21  ;;  %809 = vst [vmem:[%s1217_s5 + $0x68] sm:$0xff] %v805_v22 }
 0x254   : > { %810 = vst [vmem:[%s1217_s5 + $0x70] sm:$0xff] %v806_v23  ;;  %811 = vst [vmem:[%s1217_s5 + $0x78] sm:$0xff] %v807_v24 }
 0x255   : > { %765 = vst [vmem:[%s1217_s5 + $0x40] sm:$0xff] %v761_v25  ;;  %766 = vst [vmem:[%s1217_s5 + $0x48] sm:$0xff] %v762_v26 }
 0x256   : > { %767 = vst [vmem:[%s1217_s5 + $0x50] sm:$0xff] %v763_v27  ;;  %768 = vst [vmem:[%s1217_s5 + $0x58] sm:$0xff] %v764_v28 }
 0x257 PF: > { %s17_s23 = sadd.s32 1, %s1024_s23   ;;  %s1219_s21 = smov %s1020_s22 }
 0x258   : > { %p14_p7 = scmp.ge.s32.totalorder %s17_s23, 4   ;;  %s1220_s22 = smov %s1222_s24 }
 0x25a   :  { %16 = sbr.rel (!%p14_p7) target bundleno = 2 (0x2), region = 103 }

// kernel: _forward.3
= control target key start
LH: loop header
LB: loop body
LE: loop exit
PB: predicated region body
PF: predicated region fallthrough
CT: control target
= control target key end

     0   :  { %8 = vsyncpa [#allocation4], 0  ;;  %s6395_s0 = inlined_call_operand.vmem [shape: f32[4,3,2,16,16], index: 0, kind: input, shape index: {}]   ;;  %s6396_s1 = inlined_call_operand.vmem [shape: f32[2,128,16], index: 1, kind: input, shape index: {}]   ;;  %s6397_s2 = inlined_call_operand.vmem [shape: f32[2,16,128], index: 2, kind: input, shape index: {}]   ;;  %s6398_s3 = inlined_call_operand.hbm [shape: f32[2,3,128,128], index: 3, kind: output, shape index: {}]  }
   0x1   :  { %10 = vsyncpa [#allocation4 + $0x1], 0  ;;  %s5342_s12 = smov 0   ;;  %s5344_s13 = smov 0  }
   0x2   :  { %s5346_s14 = smov 0   ;;  %s5348_s15 = smov 0  }
   0x3 LB: > { %s3759_s16 = sadd.s32 4294967295, %s5317_s15   ;;  %s3760_s17 = sadd.s32 4294967294, %s5317_s15   ;;  %s5317_s15 = sphi %s5348_s15, %s6404_s15   ;;  %s5313_s14 = sphi %s5346_s14, %s6403_s14   ;;  %s5309_s13 = sphi %s5344_s13, %s6402_s13   ;;  %s5305_s12 = sphi %s5342_s12, %s6401_s12  }
   0x4   : > { %s5365_s18 = sadd.s32 1, %s5317_s15   ;;  %s23_s19 = sadd.s32 1, %s5313_s14 }
   0x5   : > { %s20_s20 = ssub.s32 %s5317_s15, %s5365_s18  ;;  %p30_p0 = scmp.ne.s32.totalorder %s5313_s14, %s5309_s13 }
   0x6   : > { %p21_p1 = scmp.eq.s32.totalorder %s20_s20, 0  ;;  %p31_p2 = scmp.eq.s32.totalorder %s5317_s15, 0 }
   0x7   : > { %p102_p3 = scmp.eq.s32.totalorder %s3759_s16, 1  ;;  %p107_p4 = scmp.ne.s32.totalorder %s5309_s13, %s5305_s12 }
   0x8   : > { %s5378_s21 = scalar_select %p21_p1, %s5313_s14, %s23_s19  }
   0x9   : > { %p32_p5 = por %p31_p2, %p30_p0  ;;  %p5380_p6 = por %p102_p3, %p30_p0 }
   0xa   : > { %p108_p7 = scmp.eq.s32.totalorder %s3760_s17, 1  ;;  %p3762_p9 = scmp.ge.s32.totalorder %s5317_s15, 2 }
   0xc   : > { %p5384_p8 = por %p108_p7, %p107_p4  ;;  %130 = sbr.rel (%p3762_p9) target bundleno = 35 (0x23), region = 24 }
  0x13   : > { %133 = sbr.rel (!%p32_p5) target bundleno = 35 (0x23), region = 28  ;;  %s135_s24 = sand.u32 (%p32_p5), 1, %s5313_s14  }
  0x14   : > { %s4165_s25 = sshll.u32 (%p32_p5), %s5317_s15, 4  ;;  %s5210_s26 = smul.u32 (%p32_p5), 192, %s135_s24 }
  0x15   : > { %s5396_s29 = scalar_lea.vmem (%p32_p5), %s6395_s0, %s4165_s25 }
  0x16   : > { %v214_v0 = vld [vmem:[%s5396_s29] sm:$0xff] (%p32_p5)  ;;  %v216_v1 = vld [vmem:[%s5396_s29 + $0x8] sm:$0xff] (%p32_p5)  ;;  %s5404_s30 = scalar_lea.vmem (%p32_p5), [#allocation2], %s5210_s26 }
  0x17   : > { %v218_v2 = vld [vmem:[%s5396_s29 + $0x20] sm:$0xff] (%p32_p5)  ;;  %v220_v3 = vld [vmem:[%s5396_s29 + $0x28] sm:$0xff] (%p32_p5)  ;;  %215 = vst [vmem:[%s5404_s30] sm:$0xff] (%p32_p5), %v214_v0  ;;  %217 = vst [vmem:[%s5404_s30 + $0x8] sm:$0xff] (%p32_p5), %v216_v1 }
  0x18   : > { %v222_v4 = vld [vmem:[%s5396_s29 + $0x40] sm:$0xff] (%p32_p5)  ;;  %v224_v5 = vld [vmem:[%s5396_s29 + $0x48] sm:$0xff] (%p32_p5)  ;;  %219 = vst [vmem:[%s5404_s30 + $0x10] sm:$0xff] (%p32_p5), %v218_v2  ;;  %221 = vst [vmem:[%s5404_s30 + $0x18] sm:$0xff] (%p32_p5), %v220_v3 }
  0x19   : > { %223 = vst [vmem:[%s5404_s30 + $0x20] sm:$0xff] (%p32_p5), %v222_v4  ;;  %225 = vst [vmem:[%s5404_s30 + $0x28] sm:$0xff] (%p32_p5), %v224_v5  ;;  %v226_v6 = vld [vmem:[%s5396_s29 + $0x60] sm:$0xff] (%p32_p5)  ;;  %v228_v7 = vld [vmem:[%s5396_s29 + $0x68] sm:$0xff] (%p32_p5) }
  0x1a   : > { %v230_v8 = vld [vmem:[%s5396_s29 + $0x80] sm:$0xff]  ;;  %227 = vst [vmem:[%s5404_s30 + $0x30] sm:$0xff] %v226_v6  ;;  %229 = vst [vmem:[%s5404_s30 + $0x38] sm:$0xff] %v228_v7  ;;  %v232_v9 = vld [vmem:[%s5396_s29 + $0x88] sm:$0xff] }
  0x1b   : > { %231 = vst [vmem:[%s5404_s30 + $0x40] sm:$0xff] %v230_v8  ;;  %v234_v10 = vld [vmem:[%s5396_s29 + $0xa0] sm:$0xff]  ;;  %v236_v11 = vld [vmem:[%s5396_s29 + $0xa8] sm:$0xff]  ;;  %233 = vst [vmem:[%s5404_s30 + $0x48] sm:$0xff] %v232_v9 }
  0x1c   : > { %235 = vst [vmem:[%s5404_s30 + $0x50] sm:$0xff] %v234_v10  ;;  %237 = vst [vmem:[%s5404_s30 + $0x58] sm:$0xff] %v236_v11  ;;  %v238_v12 = vld [vmem:[%s5396_s29 + $0xc0] sm:$0xff]  ;;  %v240_v13 = vld [vmem:[%s5396_s29 + $0xc8] sm:$0xff] }
  0x1d   : > { %v242_v14 = vld [vmem:[%s5396_s29 + $0xe0] sm:$0xff]  ;;  %239 = vst [vmem:[%s5404_s30 + $0x60] sm:$0xff] %v238_v12  ;;  %241 = vst [vmem:[%s5404_s30 + $0x68] sm:$0xff] %v240_v13  ;;  %v244_v15 = vld [vmem:[%s5396_s29 + $0xe8] sm:$0xff] }
  0x1e   : > { %243 = vst [vmem:[%s5404_s30 + $0x70] sm:$0xff] %v242_v14  ;;  %v246_v16 = vld [vmem:[%s5396_s29 + $0x100] sm:$0xff]  ;;  %v248_v17 = vld [vmem:[%s5396_s29 + $0x108] sm:$0xff]  ;;  %245 = vst [vmem:[%s5404_s30 + $0x78] sm:$0xff] %v244_v15 }
  0x1f   : > { %247 = vst [vmem:[%s5404_s30 + $0x80] sm:$0xff] %v246_v16  ;;  %249 = vst [vmem:[%s5404_s30 + $0x88] sm:$0xff] %v248_v17  ;;  %v250_v18 = vld [vmem:[%s5396_s29 + $0x120] sm:$0xff]  ;;  %v252_v19 = vld [vmem:[%s5396_s29 + $0x128] sm:$0xff] }
  0x20   : > { %v254_v20 = vld [vmem:[%s5396_s29 + $0x140] sm:$0xff]  ;;  %251 = vst [vmem:[%s5404_s30 + $0x90] sm:$0xff] %v250_v18  ;;  %253 = vst [vmem:[%s5404_s30 + $0x98] sm:$0xff] %v252_v19  ;;  %v256_v21 = vld [vmem:[%s5396_s29 + $0x148] sm:$0xff] }
  0x21   : > { %255 = vst [vmem:[%s5404_s30 + $0xa0] sm:$0xff] %v254_v20  ;;  %v258_v22 = vld [vmem:[%s5396_s29 + $0x160] sm:$0xff]  ;;  %v260_v23 = vld [vmem:[%s5396_s29 + $0x168] sm:$0xff]  ;;  %257 = vst [vmem:[%s5404_s30 + $0xa8] sm:$0xff] %v256_v21 }
  0x22   : > { %259 = vst [vmem:[%s5404_s30 + $0xb0] sm:$0xff] %v258_v22  ;;  %261 = vst [vmem:[%s5404_s30 + $0xb8] sm:$0xff] %v260_v23 }
  0x23 PF: > { %p3765_p10 = scmp.ge.s32.totalorder %s5317_s15, 1  ;;  %p266_p11 = scmp.lt.s32.totalorder %s5317_s15, 3 }
  0x25   : > { %p267_p12 = pnand %p3765_p10, %p266_p11 }
  0x26   : > { %s5451_s4 = sand.u32 (!%p267_p12), 1, %s5309_s13   ;;  %v5456_v24 = vld [vmem:[%s6396_s1 + $0x80] sm:$0xff] (!%p267_p12)  ;;  %vm334_vm0 = vcmask (!%p267_p12), 130048   ;;  %v5479_v35 = vld [vmem:[%s6396_s1 + $0x88] sm:$0xff] (!%p267_p12)  ;;  %v5489_v37 = vld [vmem:[%s6396_s1 + $0x90] sm:$0xff] (!%p267_p12)  ;;  %s5319_s5 = smov (!%p267_p12), [#allocation3]  }
  0x27   : > { %270 = sbr.rel (%p267_p12) target bundleno = 1236 (0x4d4), region = 66  ;;  %v5461_v25 = vld [vmem:[%s6396_s1] sm:$0xff] (!%p267_p12)  ;;  %4494 = vmatprep.mubr.msk.f32.mxu1 (!%p267_p12), %vm334_vm0, %v5456_v24  ;;  %v5484_v36 = vld [vmem:[%s6396_s1 + $0x8] sm:$0xff] (!%p267_p12)  ;;  %v5494_v38 = vld [vmem:[%s6396_s1 + $0x10] sm:$0xff] (!%p267_p12)  ;;  %s5259_s6 = sshll.u32 (!%p267_p12), %s5319_s5, 4  ;;  %s5260_s6 = int_to_ptr.vmem [resolvable:$false] %s5259_s6 }
  0x28   : > { %s5211_s9 = smul.u32 (!%p267_p12), 192, %s5451_s4  ;;  %4522 = vmatprep.mubr.msk.f32.mxu0 (!%p267_p12), %vm334_vm0, %v5461_v25  ;;  %v5503_v39 = vld [vmem:[%s6396_s1 + $0x98] sm:$0xff] (!%p267_p12)  ;;  %v5518_v42 = vld [vmem:[%s6396_s1 + $0xa0] sm:$0xff] (!%p267_p12)  ;;  %v5535_v46 = vld [vmem:[%s6396_s1 + $0xa8] sm:$0xff] (!%p267_p12)  ;;  %s5261_s7 = scalar_lea.vmem (!%p267_p12), %s5260_s6, 12288 }
  0x29   : > { %v5513_v41 = vld [vmem:[%s6396_s1 + $0x18] sm:$0xff] (!%p267_p12)  ;;  %v5524_v44 = vld [vmem:[%s6396_s1 + $0x20] sm:$0xff] (!%p267_p12)  ;;  %v5542_v47 = vld [vmem:[%s6396_s1 + $0x28] sm:$0xff] (!%p267_p12)  ;;  %s5212_s24 = smul.u32 (!%p267_p12), 384, %s5451_s4 }
  0x2a   : > { %s5468_s10 = scalar_lea.vmem (!%p267_p12), [#allocation2], %s5211_s9  ;;  %v5547_v48 = vld [vmem:[%s6396_s1 + $0xb0] sm:$0xff] (!%p267_p12)  ;;  %v5563_v50 = vld [vmem:[%s6396_s1 + $0xb8] sm:$0xff] (!%p267_p12)  ;;  %v5575_v52 = vld [vmem:[%s6396_s1 + $0xc0] sm:$0xff] (!%p267_p12) }
  0x2b   : > { %v3766_v26 = vld [vmem:[%s5468_s10 + $0x60] sm:$0xff] (!%p267_p12)  ;;  %v3767_v27 = vld [vmem:[%s5468_s10 + $0x68] sm:$0xff] (!%p267_p12)  ;;  %v3818_v31 = vld [vmem:[%s5468_s10 + $0x90] sm:$0xff] (!%p267_p12)  ;;  %s6028_s25 = scalar_lea.vmem (!%p267_p12), [#allocation3], %s5212_s24 }
  0x2c   : > { %v296_v28 = vld [vmem:[%s5468_s10] sm:$0xff] (!%p267_p12)  ;;  %v4994_v29 = vpack.c.bf16 (!%p267_p12), %v3767_v27, %v3766_v26  ;;  %v297_v30 = vld [vmem:[%s5468_s10 + $0x8] sm:$0xff] (!%p267_p12)  ;;  %v3819_v32 = vld [vmem:[%s5468_s10 + $0x98] sm:$0xff] (!%p267_p12)  ;;  %s3692_s26 = sshll.u32 (!%p267_p12), %s6028_s25, 4  ;;  %s6349_s26 = int_to_ptr.vmem [resolvable:$true] %s3692_s26 }
  0x2d   : > { %v4998_v33 = vpack.c.bf16 (!%p267_p12), %v297_v30, %v296_v28  ;;  %v5002_v34 = vpack.c.bf16 (!%p267_p12), %v3819_v32, %v3818_v31  ;;  %v3816_v40 = vld [vmem:[%s5468_s10 + $0x30] sm:$0xff] (!%p267_p12)  ;;  %v3817_v43 = vld [vmem:[%s5468_s10 + $0x38] sm:$0xff] (!%p267_p12)  ;;  %v5580_v53 = vld [vmem:[%s6396_s1 + $0x40] sm:$0xff] (!%p267_p12)  ;;  %s5255_s30 = scalar_lea.vmem (!%p267_p12), %s6349_s26, 6144  ;;  %p5262_p2 = scmp.lt.s32.totalorder (!%p267_p12), %s6349_s26, %s5260_s6 }
  0x2e   : > { %4995 = vmatprep.subr.bf16.mxu1 %v4994_v29  ;;  %v5006_v45 = vpack.c.bf16 %v3817_v43, %v3816_v40  ;;  %v5552_v49 = vld [vmem:[%s6396_s1 + $0x30] sm:$0xff]  ;;  %v5570_v51 = vld [vmem:[%s6396_s1 + $0x38] sm:$0xff]  ;;  %v5591_v54 = vld [vmem:[%s6396_s1 + $0xc8] sm:$0xff]  ;;  %p5256_p13 = scmp.ne.s32.totalorder %s6349_s26, %s5255_s30  ;;  %p5263_p3 = scmp.lt.s32.totalorder %s5261_s7, %s5255_s30 }
  0x2f   : > { %4999 = vmatprep.subr.bf16.mxu0 %v4998_v33  ;;  %4997 = vmatpush3.bf16.msra.mxu1 %v4994_v29  ;;  %v5598_v55 = vld [vmem:[%s6396_s1 + $0x48] sm:$0xff]  ;;  %v5603_v56 = vld [vmem:[%s6396_s1 + $0xd0] sm:$0xff]  ;;  %v5619_v58 = vld [vmem:[%s6396_s1 + $0xd8] sm:$0xff] }
  0x30   : > { %5001 = vmatpush3.bf16.msra.mxu0 %v4998_v33  ;;  %5003 = vmatprep.subr.bf16.mxu1 %v5002_v34  ;;  %v5608_v57 = vld [vmem:[%s6396_s1 + $0x50] sm:$0xff]  ;;  %v5626_v59 = vld [vmem:[%s6396_s1 + $0x58] sm:$0xff]  ;;  %v5631_v60 = vld [vmem:[%s6396_s1 + $0xe0] sm:$0xff]  ;;  %p5257_p0 = pnand %p5256_p13, %p5380_p6  ;;  %p5264_p4 = por %p5263_p3, %p5262_p2 }
  0x31   : > { %v5636_v61 = vld [vmem:[%s6396_s1 + $0x60] sm:$0xff]  ;;  %v5647_v62 = vld [vmem:[%s6396_s1 + $0xe8] sm:$0xff]  ;;  %v5659_v0 = vld [vmem:[%s6396_s1 + $0xf0] sm:$0xff] }
  0x32   : > { %4495 = vmatmul.mubr.msk.f32.vlgmr.msra.gmra.mrb[0].mxu1 %vm334_vm0, %v5479_v35  ;;  %v5654_v63 = vld [vmem:[%s6396_s1 + $0x68] sm:$0xff]  ;;  %v5664_v1 = vld [vmem:[%s6396_s1 + $0x70] sm:$0xff]  ;;  %v5675_v2 = vld [vmem:[%s6396_s1 + $0xf8] sm:$0xff]  ;;  %p5258_p1 = pneg %p5257_p0 }
  0x33   : > { %4523 = vmatmul.mubr.msk.f32.vlgmr.msra.gmra.mrb[0].mxu0 %vm334_vm0, %v5484_v36  ;;  %5005 = vmatpush3.bf16.msra.mxu1 %v5002_v34  ;;  %v5682_v3 = vld [vmem:[%s6396_s1 + $0x78] sm:$0xff]  ;;  %v3852_v4 = vld [vmem:[%s6397_s2 + $0x10] sm:$0xff]  ;;  %v721_v7 = vld [vmem:[%s6397_s2] sm:$0xff] }
  0x34   : > { %4497 = vmatprep.mubr.msk.f32.mxu1 %vm334_vm0, %v5489_v37  ;;  %4525 = vmatprep.mubr.msk.f32.mxu0 %vm334_vm0, %v5494_v38  ;;  %v3853_v5 = vld [vmem:[%s6397_s2 + $0x18] sm:$0xff]  ;;  %v722_v8 = vld [vmem:[%s6397_s2 + $0x8] sm:$0xff]  ;;  %v3888_v10 = vld [vmem:[%s5468_s10 + $0x70] sm:$0xff]  ;;  %p5265_p5 = pnand %p5264_p4, %p5258_p1 }
  0x35   : > { %5007 = vmatprep.subr.bf16.mxu1 %v5006_v45  ;;  %v5760_v6 = vpack.c.bf16 %v3853_v5, %v3852_v4  ;;  %v5770_v9 = vpack.c.bf16 %v722_v8, %v721_v7  ;;  %v3889_v11 = vld [vmem:[%s5468_s10 + $0x78] sm:$0xff] }
  0x36   : > { %4498 = vmatmul.mubr.msk.f32.gmra.mrb[2].mxu1 %vm334_vm0, %v5503_v39  ;;  %v5018_v12 = vpack.c.bf16 %v3889_v11, %v3888_v10 }
  0x37   : > { %4526 = vmatmul.mubr.msk.f32.gmra.mrb[2].mxu0 %vm334_vm0, %v5513_v41  ;;  %4500 = vmatprep.mubr.msk.f32.mxu1 %vm334_vm0, %v5518_v42 }
  0x38   : > { %4528 = vmatprep.mubr.msk.f32.mxu0 %vm334_vm0, %v5524_v44  ;;  %5011 = vmatprep.subr.bf16.mxu0 %v5760_v6 }
  0x39   : > { %5013 = vmatpush3.bf16.msra.mxu0 %v5760_v6 }
  0x3a   : > { %4501 = vmatmul.mubr.msk.f32.gmra.mrb[4].mxu1 %vm334_vm0, %v5535_v46  ;;  %5015 = vmatprep.subr.bf16.mxu0 %v5770_v9 }
  0x3b   : > { %4529 = vmatmul.mubr.msk.f32.gmra.mrb[4].mxu0 %vm334_vm0, %v5542_v47  ;;  %4503 = vmatprep.mubr.msk.f32.mxu1 %vm334_vm0, %v5547_v48 }
  0x3c   : > { %4531 = vmatprep.mubr.msk.f32.mxu0 %vm334_vm0, %v5552_v49 }
  0x3e   : > { %4504 = vmatmul.mubr.msk.f32.gmra.mrb[6].mxu1 %vm334_vm0, %v5563_v50 }
  0x3f   : > { %4532 = vmatmul.mubr.msk.f32.gmra.mrb[6].mxu0 %vm334_vm0, %v5570_v51  ;;  %4506 = vmatprep.mubr.msk.f32.mxu1 %vm334_vm0, %v5575_v52 }
  0x40   : > { %4534 = vmatprep.mubr.msk.f32.mxu0 %vm334_vm0, %v5580_v53 }
  0x42   : > { %4507 = vmatmul.mubr.msk.f32.gmra.mrb[8].mxu1 %vm334_vm0, %v5591_v54 }
  0x43   : > { %4535 = vmatmul.mubr.msk.f32.gmra.mrb[8].mxu0 %vm334_vm0, %v5598_v55  ;;  %4509 = vmatprep.mubr.msk.f32.mxu1 %vm334_vm0, %v5603_v56 }
  0x44   : > { %4537 = vmatprep.mubr.msk.f32.mxu0 %vm334_vm0, %v5608_v57 }
  0x46   : > { %4510 = vmatmul.mubr.msk.f32.gmra.mrb[10].mxu1 %vm334_vm0, %v5619_v58 }
  0x47   : > { %4538 = vmatmul.mubr.msk.f32.gmra.mrb[10].mxu0 %vm334_vm0, %v5626_v59  ;;  %4512 = vmatprep.mubr.msk.f32.mxu1 %vm334_vm0, %v5631_v60 }
  0x48   : > { %4540 = vmatprep.mubr.msk.f32.mxu0 %vm334_vm0, %v5636_v61 }
  0x4a   : > { %4513 = vmatmul.mubr.msk.f32.gmra.mrb[12].mxu1 %vm334_vm0, %v5647_v62 }
  0x4b   : > { %4541 = vmatmul.mubr.msk.f32.gmra.mrb[12].mxu0 %vm334_vm0, %v5654_v63  ;;  %4515 = vmatprep.mubr.msk.f32.mxu1 %vm334_vm0, %v5659_v0 }
  0x4c   : > { %4543 = vmatprep.mubr.msk.f32.mxu0 %vm334_vm0, %v5664_v1 }
  0x4e   : > { %4516 = vmatmul.mubr.msk.f32.gmra.mrb[14].mxu1 %vm334_vm0, %v5675_v2 }
  0x4f   : > { %4544 = vmatmul.mubr.msk.f32.gmra.mrb[14].mxu0 %vm334_vm0, %v5682_v3  ;;  %4550 = vmatprep.mubr.msk.f32.mxu1 %vm334_vm0, %v5456_v24 }
  0x52   : > { %4551 = vmatmul.mubr.msk.f32.vlgmr.msra.gmra.mrb[16].mxu1 %vm334_vm0, %v5479_v35 }
  0x53   : > { %5009 = vmatpush3.bf16.msra.mxu1 %v5006_v45  ;;  %4553 = vmatprep.mubr.msk.f32.mxu1 %vm334_vm0, %v5489_v37 }
  0x54   : > { %5019 = vmatprep.subr.bf16.mxu1 %v5018_v12 }
  0x56   : > { %4554 = vmatmul.mubr.msk.f32.gmra.mrb[18].mxu1 %vm334_vm0, %v5503_v39 }
  0x57   : > { %4556 = vmatprep.mubr.msk.f32.mxu1 %vm334_vm0, %v5518_v42 }
  0x5a   : > { %4557 = vmatmul.mubr.msk.f32.gmra.mrb[20].mxu1 %vm334_vm0, %v5535_v46 }
  0x5b   : > { %4559 = vmatprep.mubr.msk.f32.mxu1 %vm334_vm0, %v5547_v48 }
  0x5e   : > { %4560 = vmatmul.mubr.msk.f32.gmra.mrb[22].mxu1 %vm334_vm0, %v5563_v50 }
  0x5f   : > { %4562 = vmatprep.mubr.msk.f32.mxu1 %vm334_vm0, %v5575_v52 }
  0x62   : > { %4563 = vmatmul.mubr.msk.f32.gmra.mrb[24].mxu1 %vm334_vm0, %v5591_v54 }
  0x63   : > { %4565 = vmatprep.mubr.msk.f32.mxu1 %vm334_vm0, %v5603_v56 }
  0x66   : > { %4566 = vmatmul.mubr.msk.f32.gmra.mrb[26].mxu1 %vm334_vm0, %v5619_v58 }
  0x67   : > { %4568 = vmatprep.mubr.msk.f32.mxu1 %vm334_vm0, %v5631_v60 }
  0x6a   : > { %4569 = vmatmul.mubr.msk.f32.gmra.mrb[28].mxu1 %vm334_vm0, %v5647_v62 }
  0x6b   : > { %4571 = vmatprep.mubr.msk.f32.mxu1 %vm334_vm0, %v5659_v0 }
  0x6e   : > { %4572 = vmatmul.mubr.msk.f32.gmra.mrb[30].mxu1 %vm334_vm0, %v5675_v2 }
  0x6f   : > { %4578 = vmatprep.mubr.msk.f32.mxu1 %vm334_vm0, %v5461_v25 }
  0x72   : > { %4579 = vmatmul.mubr.msk.f32.vlgmr.msra.gmra.mrb[16].mxu1 %vm334_vm0, %v5484_v36 }
  0x73   : > { %4581 = vmatprep.mubr.msk.f32.mxu1 %vm334_vm0, %v5494_v38  ;;  %5021 = vmatpush3.bf16.msra.mxu1 %v5018_v12 }
  0x76   : > { %4582 = vmatmul.mubr.msk.f32.gmra.mrb[18].mxu1 %vm334_vm0, %v5513_v41 }
  0x77   : > { %4584 = vmatprep.mubr.msk.f32.mxu1 %vm334_vm0, %v5524_v44 }
  0x7a   : > { %4585 = vmatmul.mubr.msk.f32.gmra.mrb[20].mxu1 %vm334_vm0, %v5542_v47 }
  0x7b   : > { %4587 = vmatprep.mubr.msk.f32.mxu1 %vm334_vm0, %v5552_v49 }
  0x7e   : > { %4588 = vmatmul.mubr.msk.f32.gmra.mrb[22].mxu1 %vm334_vm0, %v5570_v51 }
  0x7f   : > { %4590 = vmatprep.mubr.msk.f32.mxu1 %vm334_vm0, %v5580_v53 }
  0x82   : > { %4591 = vmatmul.mubr.msk.f32.gmra.mrb[24].mxu1 %vm334_vm0, %v5598_v55 }
  0x83   : > { %4593 = vmatprep.mubr.msk.f32.mxu1 %vm334_vm0, %v5608_v57 }
  0x86   : > { %4594 = vmatmul.mubr.msk.f32.gmra.mrb[26].mxu1 %vm334_vm0, %v5626_v59 }
  0x87   : > { %4596 = vmatprep.mubr.msk.f32.mxu1 %vm334_vm0, %v5636_v61 }
  0x8a   : > { %4597 = vmatmul.mubr.msk.f32.gmra.mrb[28].mxu1 %vm334_vm0, %v5654_v63 }
  0x8b   : > { %4599 = vmatprep.mubr.msk.f32.mxu1 %vm334_vm0, %v5664_v1 }
  0x8e   : > { %4600 = vmatmul.mubr.msk.f32.gmra.mrb[30].mxu1 %vm334_vm0, %v5682_v3 }
  0x8f   : > { %4662 = vmatprep.mubr.msk.f32.mxu1 %vm334_vm0, %v5456_v24 }
  0x92   : > { %4663 = vmatmul.mubr.msk.f32.vlgmr.msra.gmra.mrb[32].mxu1 %vm334_vm0, %v5479_v35 }
  0x93   : > { %4665 = vmatprep.mubr.msk.f32.mxu1 %vm334_vm0, %v5489_v37 }
  0x96   : > { %4666 = vmatmul.mubr.msk.f32.gmra.mrb[34].mxu1 %vm334_vm0, %v5503_v39 }
  0x97   : > { %4668 = vmatprep.mubr.msk.f32.mxu1 %vm334_vm0, %v5518_v42 }
  0x9a   : > { %4669 = vmatmul.mubr.msk.f32.gmra.mrb[36].mxu1 %vm334_vm0, %v5535_v46 }
  0x9b   : > { %4671 = vmatprep.mubr.msk.f32.mxu1 %vm334_vm0, %v5547_v48 }
  0x9e   : > { %4672 = vmatmul.mubr.msk.f32.gmra.mrb[38].mxu1 %vm334_vm0, %v5563_v50 }
  0x9f   : > { %4674 = vmatprep.mubr.msk.f32.mxu1 %vm334_vm0, %v5575_v52 }
  0xa2   : > { %4675 = vmatmul.mubr.msk.f32.gmra.mrb[40].mxu1 %vm334_vm0, %v5591_v54 }
  0xa3   : > { %4677 = vmatprep.mubr.msk.f32.mxu1 %vm334_vm0, %v5603_v56 }
  0xa6   : > { %4678 = vmatmul.mubr.msk.f32.gmra.mrb[42].mxu1 %vm334_vm0, %v5619_v58 }
  0xa7   : > { %4680 = vmatprep.mubr.msk.f32.mxu1 %vm334_vm0, %v5631_v60 }
  0xaa   : > { %4681 = vmatmul.mubr.msk.f32.gmra.mrb[44].mxu1 %vm334_vm0, %v5647_v62 }
  0xab   : > { %4683 = vmatprep.mubr.msk.f32.mxu1 %vm334_vm0, %v5659_v0 }
  0xae   : > { %4684 = vmatmul.mubr.msk.f32.gmra.mrb[46].mxu1 %vm334_vm0, %v5675_v2 }
  0xaf   : > { %4690 = vmatprep.mubr.msk.f32.mxu1 %vm334_vm0, %v5461_v25 }
 0x105   : > { %v4496_v13 = vpop.f32.mrb[0].mxu1 }
 0x106   : > { %v4524_v14 = vpop.f32.mrb[0].mxu0  ;;  %v449_v15 = vpop.f32.mrb[1].mxu1 }
 0x107   : > { %v5775_v16 = vadd.f32 %v4524_v14, %v4496_v13  ;;  %v642_v17 = vpop.f32.mrb[1].mxu0 }
 0x108   : > { %v5777_v18 = vadd.f32 %v642_v17, %v449_v15 }
 0x109   : > { %v4499_v19 = vpop.f32.mrb[2].mxu1 }
 0x10a   : > { %v4527_v20 = vpop.f32.mrb[2].mxu0  ;;  %v459_v21 = vpop.f32.mrb[3].mxu1 }
 0x10b   : > { %v5783_v22 = vadd.f32 %v4527_v20, %v4499_v19  ;;  %v652_v23 = vpop.f32.mrb[3].mxu0 }
 0x10c   : > { %v5785_v26 = vadd.f32 %v652_v23, %v459_v21 }
 0x10d   : > { %v4502_v27 = vpop.f32.mrb[4].mxu1 }
 0x10e   : > { %v4530_v28 = vpop.f32.mrb[4].mxu0  ;;  %v469_v29 = vpop.f32.mrb[5].mxu1 }
 0x10f   : > { %v5791_v30 = vadd.f32 %v4530_v28, %v4502_v27  ;;  %v662_v31 = vpop.f32.mrb[5].mxu0 }
 0x110   : > { %v5793_v32 = vadd.f32 %v662_v31, %v469_v29 }
 0x111   : > { %v4505_v33 = vpop.f32.mrb[6].mxu1 }
 0x112   : > { %v4533_v34 = vpop.f32.mrb[6].mxu0  ;;  %v479_v40 = vpop.f32.mrb[7].mxu1 }
 0x113   : > { %v5799_v43 = vadd.f32 %v4533_v34, %v4505_v33  ;;  %v672_v45 = vpop.f32.mrb[7].mxu0  ;;  %v3886_v34 = vld [vmem:[%s5468_s10 + $0x10] sm:$0xff] }
 0x114   : > { %v5801_v4 = vadd.f32 %v672_v45, %v479_v40  ;;  %v3887_v40 = vld [vmem:[%s5468_s10 + $0x18] sm:$0xff] }
 0x115   : > { %v4508_v5 = vpop.f32.mrb[8].mxu1 }
 0x116   : > { %v4536_v7 = vpop.f32.mrb[8].mxu0  ;;  %v489_v8 = vpop.f32.mrb[9].mxu1 }
 0x117   : > { %v5807_v10 = vadd.f32 %v4536_v7, %v4508_v5  ;;  %v682_v11 = vpop.f32.mrb[9].mxu0  ;;  %v5022_v7 = vpack.c.bf16 %v3887_v40, %v3886_v34 }
 0x118   : > { %v5809_v12 = vadd.f32 %v682_v11, %v489_v8 }
 0x119   : > { %v4511_v13 = vpop.f32.mrb[10].mxu1  ;;  %5023 = vmatprep.subr.bf16.mxu1 %v5022_v7 }
 0x11a   : > { %v4539_v14 = vpop.f32.mrb[10].mxu0  ;;  %v499_v15 = vpop.f32.mrb[11].mxu1  ;;  %5025 = vmatpush3.bf16.msra.mxu1 %v5022_v7 }
 0x11b   : > { %v5815_v17 = vadd.f32 %v4539_v14, %v4511_v13  ;;  %v692_v19 = vpop.f32.mrb[11].mxu0  ;;  %5035 = vmatprep.subr.bf16.mxu1 %v5760_v6  ;;  %v3940_v14 = vld [vmem:[%s5468_s10 + $0xa0] sm:$0xff] }
 0x11c   : > { %v5817_v20 = vadd.f32 %v692_v19, %v499_v15  ;;  %v3941_v15 = vld [vmem:[%s5468_s10 + $0xa8] sm:$0xff] }
 0x11d   : > { %v4514_v21 = vpop.f32.mrb[12].mxu1  ;;  %4691 = vmatmul.mubr.msk.f32.vlgmr.msra.gmra.mrb[32].mxu1 %vm334_vm0, %v5484_v36 }
 0x11e   : > { %v4542_v23 = vpop.f32.mrb[12].mxu0  ;;  %v509_v27 = vpop.f32.mrb[13].mxu1  ;;  %4693 = vmatprep.mubr.msk.f32.mxu1 %vm334_vm0, %v5494_v38  ;;  %5037 = vmatpush3.bf16.msra.mxu1 %v5760_v6 }
 0x11f   : > { %v5823_v28 = vadd.f32 %v4542_v23, %v4514_v21  ;;  %v702_v29 = vpop.f32.mrb[13].mxu0  ;;  %5039 = vmatprep.subr.bf16.mxu1 %v5770_v9  ;;  %v5026_v23 = vpack.c.bf16 %v3941_v15, %v3940_v14 }
 0x120   : > { %v5825_v31 = vadd.f32 %v702_v29, %v509_v27 }
 0x121   : > { %v4517_v33 = vpop.f32.mrb[14].mxu1  ;;  %4694 = vmatmul.mubr.msk.f32.gmra.mrb[34].mxu1 %vm334_vm0, %v5513_v41 }
 0x122   : > { %v4545_v45 = vpop.f32.mrb[14].mxu0  ;;  %v519_v5 = vpop.f32.mrb[15].mxu1  ;;  %4696 = vmatprep.mubr.msk.f32.mxu1 %vm334_vm0, %v5524_v44 }
 0x123   : > { %v5833_v8 = vadd.f32 %v4545_v45, %v4517_v33  ;;  %v712_v11 = vpop.f32.mrb[15].mxu0 }
 0x124   : > { %v5835_v13 = vadd.f32 %v712_v11, %v519_v5 }
 0x125   : > { %4697 = vmatmul.mubr.msk.f32.gmra.mrb[36].mxu1 %vm334_vm0, %v5542_v47 }
 0x126   : > { %4699 = vmatprep.mubr.msk.f32.mxu1 %vm334_vm0, %v5552_v49 }
 0x129   : > { %4700 = vmatmul.mubr.msk.f32.gmra.mrb[38].mxu1 %vm334_vm0, %v5570_v51 }
 0x12a   : > { %4702 = vmatprep.mubr.msk.f32.mxu1 %vm334_vm0, %v5580_v53 }
 0x12d   : > { %4703 = vmatmul.mubr.msk.f32.gmra.mrb[40].mxu1 %vm334_vm0, %v5598_v55 }
 0x12e   : > { %4705 = vmatprep.mubr.msk.f32.mxu1 %vm334_vm0, %v5608_v57 }
 0x131   : > { %4706 = vmatmul.mubr.msk.f32.gmra.mrb[42].mxu1 %vm334_vm0, %v5626_v59 }
 0x132   : > { %4708 = vmatprep.mubr.msk.f32.mxu1 %vm334_vm0, %v5636_v61 }
 0x135   : > { %4709 = vmatmul.mubr.msk.f32.gmra.mrb[44].mxu1 %vm334_vm0, %v5654_v63 }
 0x136   : > { %4711 = vmatprep.mubr.msk.f32.mxu1 %vm334_vm0, %v5664_v1 }
 0x139   : > { %4712 = vmatmul.mubr.msk.f32.gmra.mrb[46].mxu1 %vm334_vm0, %v5682_v3 }
 0x145   : > { %v4580_v19 = vpop.f32.mrb[16].mxu1 }
 0x146   : > { %v940_v21 = vpop.f32.mrb[17].mxu1 }
 0x147   : > { %4606 = vmatprep.mubr.msk.f32.mxu0 %vm334_vm0, %v940_v21 }
 0x148   : > { %4607 = vmatmul.mubr.msk.f32.vlgmr.msra.gmra.mrb[16].mxu0 %vm334_vm0, %v4580_v19 }
 0x149   : > { %v4583_v27 = vpop.f32.mrb[18].mxu1  ;;  %5017 = vmatpush3.bf16.msra.mxu0 %v5770_v9 }
 0x14a   : > { %v950_v29 = vpop.f32.mrb[19].mxu1  ;;  %5027 = vmatprep.subr.bf16.mxu0 %v5026_v23 }
 0x14b   : > { %4609 = vmatprep.mubr.msk.f32.mxu0 %vm334_vm0, %v950_v29  ;;  %v3938_v29 = vld [vmem:[%s5468_s10 + $0x40] sm:$0xff] }
 0x14c   : > { %4610 = vmatmul.mubr.msk.f32.gmra.mrb[18].mxu0 %vm334_vm0, %v4583_v27 }
 0x14d   : > { %v4586_v33 = vpop.f32.mrb[20].mxu1 }
 0x14e   : > { %v960_v34 = vpop.f32.mrb[21].mxu1 }
 0x14f   : > { %4612 = vmatprep.mubr.msk.f32.mxu0 %vm334_vm0, %v960_v34 }
 0x150   : > { %4613 = vmatmul.mubr.msk.f32.gmra.mrb[20].mxu0 %vm334_vm0, %v4586_v33  ;;  %v3939_v33 = vld [vmem:[%s5468_s10 + $0x48] sm:$0xff] }
 0x151   : > { %v4589_v40 = vpop.f32.mrb[22].mxu1  ;;  %v5030_v34 = vpack.c.bf16 %v3939_v33, %v3938_v29 }
 0x152   : > { %v970_v45 = vpop.f32.mrb[23].mxu1 }
 0x153   : > { %4615 = vmatprep.mubr.msk.f32.mxu0 %vm334_vm0, %v970_v45 }
 0x154   : > { %4616 = vmatmul.mubr.msk.f32.gmra.mrb[22].mxu0 %vm334_vm0, %v4589_v40  ;;  %v4027_v40 = vld [vmem:[%s5468_s10 + $0x88] sm:$0xff] }
 0x155   : > { %v4592_v5 = vpop.f32.mrb[24].mxu1 }
 0x156   : > { %v980_v7 = vpop.f32.mrb[25].mxu1 }
 0x157   : > { %4618 = vmatprep.mubr.msk.f32.mxu0 %vm334_vm0, %v980_v7 }
 0x158   : > { %4619 = vmatmul.mubr.msk.f32.gmra.mrb[24].mxu0 %vm334_vm0, %v4592_v5 }
 0x159   : > { %v4595_v11 = vpop.f32.mrb[26].mxu1 }
 0x15a   : > { %v990_v14 = vpop.f32.mrb[27].mxu1 }
 0x15b   : > { %4621 = vmatprep.mubr.msk.f32.mxu0 %vm334_vm0, %v990_v14 }
 0x15c   : > { %4622 = vmatmul.mubr.msk.f32.gmra.mrb[26].mxu0 %vm334_vm0, %v4595_v11 }
 0x15d   : > { %v4598_v15 = vpop.f32.mrb[28].mxu1 }
 0x15e   : > { %v1000_v19 = vpop.f32.mrb[29].mxu1 }
 0x15f   : > { %4624 = vmatprep.mubr.msk.f32.mxu0 %vm334_vm0, %v1000_v19 }
 0x160   : > { %4625 = vmatmul.mubr.msk.f32.gmra.mrb[28].mxu0 %vm334_vm0, %v4598_v15 }
 0x161   : > { %v4601_v21 = vpop.f32.mrb[30].mxu1 }
 0x162   : > { %v1010_v27 = vpop.f32.mrb[31].mxu1 }
 0x163   : > { %4627 = vmatprep.mubr.msk.f32.mxu0 %vm334_vm0, %v1010_v27 }
 0x164   : > { %4628 = vmatmul.mubr.msk.f32.gmra.mrb[30].mxu0 %vm334_vm0, %v4601_v21 }
 0x165   : > { %4634 = vmatprep.mubr.msk.f32.mxu0 %vm334_vm0, %v5777_v18 }
 0x168   : > { %4635 = vmatmul.mubr.msk.f32.vlgmr.msra.gmra.mrb[16].mxu0 %vm334_vm0, %v5775_v16 }
 0x169   : > { %4637 = vmatprep.mubr.msk.f32.mxu0 %vm334_vm0, %v5785_v26  ;;  %5029 = vmatpush3.bf16.msra.mxu0 %v5026_v23  ;;  %v4026_v23 = vld [vmem:[%s5468_s10 + $0x80] sm:$0xff] }
 0x16a   : > { %5031 = vmatprep.subr.bf16.mxu0 %v5030_v34  ;;  %v5042_v45 = vpack.c.bf16 %v4027_v40, %v4026_v23 }
 0x16c   : > { %4638 = vmatmul.mubr.msk.f32.gmra.mrb[18].mxu0 %vm334_vm0, %v5783_v22 }
 0x16d   : > { %4640 = vmatprep.mubr.msk.f32.mxu0 %vm334_vm0, %v5793_v32 }
 0x170   : > { %4641 = vmatmul.mubr.msk.f32.gmra.mrb[20].mxu0 %vm334_vm0, %v5791_v30 }
 0x171   : > { %4643 = vmatprep.mubr.msk.f32.mxu0 %vm334_vm0, %v5801_v4 }
 0x174   : > { %4644 = vmatmul.mubr.msk.f32.gmra.mrb[22].mxu0 %vm334_vm0, %v5799_v43 }
 0x175   : > { %4646 = vmatprep.mubr.msk.f32.mxu0 %vm334_vm0, %v5809_v12 }
 0x178   : > { %4647 = vmatmul.mubr.msk.f32.gmra.mrb[24].mxu0 %vm334_vm0, %v5807_v10 }
 0x179   : > { %4649 = vmatprep.mubr.msk.f32.mxu0 %vm334_vm0, %v5817_v20 }
 0x17c   : > { %4650 = vmatmul.mubr.msk.f32.gmra.mrb[26].mxu0 %vm334_vm0, %v5815_v17 }
 0x17d   : > { %4652 = vmatprep.mubr.msk.f32.mxu0 %vm334_vm0, %v5825_v31 }
 0x180   : > { %4653 = vmatmul.mubr.msk.f32.gmra.mrb[28].mxu0 %vm334_vm0, %v5823_v28 }
 0x181   : > { %4655 = vmatprep.mubr.msk.f32.mxu0 %vm334_vm0, %v5835_v13 }
 0x184   : > { %4656 = vmatmul.mubr.msk.f32.gmra.mrb[30].mxu0 %vm334_vm0, %v5833_v8 }
 0x185   : > { %4718 = vmatprep.mubr.msk.f32.mxu0 %vm334_vm0, %v5456_v24 }
 0x188   : > { %4719 = vmatmul.mubr.msk.f32.vlgmr.msra.gmra.mrb[32].mxu0 %vm334_vm0, %v5479_v35 }
 0x189   : > { %5033 = vmatpush3.bf16.msra.mxu0 %v5030_v34  ;;  %4721 = vmatprep.mubr.msk.f32.mxu0 %vm334_vm0, %v5489_v37 }
 0x18a   : > { %5043 = vmatprep.subr.bf16.mxu0 %v5042_v45 }
 0x18c   : > { %4722 = vmatmul.mubr.msk.f32.gmra.mrb[34].mxu0 %vm334_vm0, %v5503_v39 }
 0x18d   : > { %4724 = vmatprep.mubr.msk.f32.mxu0 %vm334_vm0, %v5518_v42 }
 0x190   : > { %4725 = vmatmul.mubr.msk.f32.gmra.mrb[36].mxu0 %vm334_vm0, %v5535_v46 }
 0x191   : > { %4727 = vmatprep.mubr.msk.f32.mxu0 %vm334_vm0, %v5547_v48 }
 0x194   : > { %4728 = vmatmul.mubr.msk.f32.gmra.mrb[38].mxu0 %vm334_vm0, %v5563_v50 }
 0x195   : > { %4730 = vmatprep.mubr.msk.f32.mxu0 %vm334_vm0, %v5575_v52 }
 0x198   : > { %4731 = vmatmul.mubr.msk.f32.gmra.mrb[40].mxu0 %vm334_vm0, %v5591_v54 }
 0x199   : > { %4733 = vmatprep.mubr.msk.f32.mxu0 %vm334_vm0, %v5603_v56 }
 0x19c   : > { %4734 = vmatmul.mubr.msk.f32.gmra.mrb[42].mxu0 %vm334_vm0, %v5619_v58 }
 0x19d   : > { %4736 = vmatprep.mubr.msk.f32.mxu0 %vm334_vm0, %v5631_v60 }
 0x1a0   : > { %4737 = vmatmul.mubr.msk.f32.gmra.mrb[44].mxu0 %vm334_vm0, %v5647_v62 }
 0x1a1   : > { %4739 = vmatprep.mubr.msk.f32.mxu0 %vm334_vm0, %v5659_v0 }
 0x1a4   : > { %4740 = vmatmul.mubr.msk.f32.gmra.mrb[46].mxu0 %vm334_vm0, %v5675_v2 }
 0x1a5   : > { %4746 = vmatprep.mubr.msk.f32.mxu0 %vm334_vm0, %v5461_v25 }
 0x1a8   : > { %4747 = vmatmul.mubr.msk.f32.vlgmr.msra.gmra.mrb[32].mxu0 %vm334_vm0, %v5484_v36 }
 0x1a9   : > { %4749 = vmatprep.mubr.msk.f32.mxu0 %vm334_vm0, %v5494_v38  ;;  %5045 = vmatpush3.bf16.msra.mxu0 %v5042_v45 }
 0x1ac   : > { %4750 = vmatmul.mubr.msk.f32.gmra.mrb[34].mxu0 %vm334_vm0, %v5513_v41 }
 0x1ad   : > { %4752 = vmatprep.mubr.msk.f32.mxu0 %vm334_vm0, %v5524_v44 }
 0x1b0   : > { %4753 = vmatmul.mubr.msk.f32.gmra.mrb[36].mxu0 %vm334_vm0, %v5542_v47 }
 0x1b1   : > { %4755 = vmatprep.mubr.msk.f32.mxu0 %vm334_vm0, %v5552_v49 }
 0x1b4   : > { %4756 = vmatmul.mubr.msk.f32.gmra.mrb[38].mxu0 %vm334_vm0, %v5570_v51 }
 0x1b5   : > { %4758 = vmatprep.mubr.msk.f32.mxu0 %vm334_vm0, %v5580_v53 }
 0x1b8   : > { %4759 = vmatmul.mubr.msk.f32.gmra.mrb[40].mxu0 %vm334_vm0, %v5598_v55 }
 0x1b9   : > { %4761 = vmatprep.mubr.msk.f32.mxu0 %vm334_vm0, %v5608_v57 }
 0x1bc   : > { %4762 = vmatmul.mubr.msk.f32.gmra.mrb[42].mxu0 %vm334_vm0, %v5626_v59 }
 0x1bd   : > { %4764 = vmatprep.mubr.msk.f32.mxu0 %vm334_vm0, %v5636_v61 }
 0x1c0   : > { %4765 = vmatmul.mubr.msk.f32.gmra.mrb[44].mxu0 %vm334_vm0, %v5654_v63 }
 0x1c1   : > { %4767 = vmatprep.mubr.msk.f32.mxu0 %vm334_vm0, %v5664_v1 }
 0x1c4   : > { %4768 = vmatmul.mubr.msk.f32.gmra.mrb[46].mxu0 %vm334_vm0, %v5682_v3 }
 0x1c5   : > { %4830 = vmatprep.mubr.msk.f32.mxu0 %vm334_vm0, %v5456_v24 }
 0x1c8   : > { %4831 = vmatmul.mubr.msk.f32.vlgmr.msra.gmra.mrb[48].mxu0 %vm334_vm0, %v5479_v35 }
 0x1c9   : > { %4833 = vmatprep.mubr.msk.f32.mxu0 %vm334_vm0, %v5489_v37 }
 0x1cc   : > { %4834 = vmatmul.mubr.msk.f32.gmra.mrb[50].mxu0 %vm334_vm0, %v5503_v39 }
 0x1cd   : > { %4836 = vmatprep.mubr.msk.f32.mxu0 %vm334_vm0, %v5518_v42 }
 0x1d0   : > { %4837 = vmatmul.mubr.msk.f32.gmra.mrb[52].mxu0 %vm334_vm0, %v5535_v46 }
 0x1d1   : > { %4839 = vmatprep.mubr.msk.f32.mxu0 %vm334_vm0, %v5547_v48 }
 0x1d4   : > { %4840 = vmatmul.mubr.msk.f32.gmra.mrb[54].mxu0 %vm334_vm0, %v5563_v50 }
 0x1d5   : > { %4842 = vmatprep.mubr.msk.f32.mxu0 %vm334_vm0, %v5575_v52 }
 0x1d8   : > { %4843 = vmatmul.mubr.msk.f32.gmra.mrb[56].mxu0 %vm334_vm0, %v5591_v54 }
 0x1d9   : > { %4845 = vmatprep.mubr.msk.f32.mxu0 %vm334_vm0, %v5603_v56 }
 0x1dc   : > { %4846 = vmatmul.mubr.msk.f32.gmra.mrb[58].mxu0 %vm334_vm0, %v5619_v58 }
 0x1dd   : > { %4848 = vmatprep.mubr.msk.f32.mxu0 %vm334_vm0, %v5631_v60 }
 0x1e0   : > { %4849 = vmatmul.mubr.msk.f32.gmra.mrb[60].mxu0 %vm334_vm0, %v5647_v62 }
 0x1e1   : > { %4851 = vmatprep.mubr.msk.f32.mxu0 %vm334_vm0, %v5659_v0 }
 0x1e4   : > { %4852 = vmatmul.mubr.msk.f32.gmra.mrb[62].mxu0 %vm334_vm0, %v5675_v2 }
 0x1e5   : > { %4858 = vmatprep.mubr.msk.f32.mxu0 %vm334_vm0, %v5461_v25 }
 0x1f0   : > { %v5993_v16 = vpop.f32.mrb[32].mxu1 }
 0x1f1   : > { %v5995_v18 = vpop.f32.mrb[33].mxu1 }
 0x1f4   : > { %v5997_v22 = vpop.f32.mrb[34].mxu1 }
 0x1f5   : > { %v5999_v26 = vpop.f32.mrb[35].mxu1 }
 0x1f8   : > { %v6001_v30 = vpop.f32.mrb[36].mxu1 }
 0x1f9   : > { %v6003_v32 = vpop.f32.mrb[37].mxu1 }
 0x1fc   : > { %v6005_v43 = vpop.f32.mrb[38].mxu1 }
 0x1fd   : > { %v6007_v4 = vpop.f32.mrb[39].mxu1 }
 0x200   : > { %v6009_v10 = vpop.f32.mrb[40].mxu1 }
 0x201   : > { %v6011_v12 = vpop.f32.mrb[41].mxu1 }
 0x204   : > { %v6013_v17 = vpop.f32.mrb[42].mxu1 }
 0x205   : > { %v6015_v20 = vpop.f32.mrb[43].mxu1 }
 0x208   : > { %v6017_v28 = vpop.f32.mrb[44].mxu1 }
 0x209   : > { %v6019_v31 = vpop.f32.mrb[45].mxu1 }
 0x20c   : > { %v6021_v8 = vpop.f32.mrb[46].mxu1 }
 0x20d   : > { %v6023_v13 = vpop.f32.mrb[47].mxu1 }
 0x23b   : > { %v4636_v5 = vpop.f32.mrb[16].mxu0 }
 0x23c   : > { %1409 = vst [vmem:[%s6028_s25 + $0x8] sm:$0xff] %v4636_v5  ;;  %v1329_v7 = vpop.f32.mrb[17].mxu0 }
 0x23d   : > { %1408 = vst [vmem:[%s6028_s25] sm:$0xff] %v1329_v7  ;;  %v4024_v7 = vld [vmem:[%s5468_s10 + $0x20] sm:$0xff] }
 0x23f   : > { %v4639_v11 = vpop.f32.mrb[18].mxu0 }
 0x240   : > { %1411 = vst [vmem:[%s6028_s25 + $0x18] sm:$0xff] %v4639_v11  ;;  %v1339_v14 = vpop.f32.mrb[19].mxu0  ;;  %v4025_v11 = vld [vmem:[%s5468_s10 + $0x28] sm:$0xff] }
 0x241   : > { %1410 = vst [vmem:[%s6028_s25 + $0x10] sm:$0xff] %v1339_v14 }
 0x243   : > { %v4642_v15 = vpop.f32.mrb[20].mxu0 }
 0x244   : > { %1413 = vst [vmem:[%s6028_s25 + $0x28] sm:$0xff] %v4642_v15  ;;  %v1349_v19 = vpop.f32.mrb[21].mxu0  ;;  %v5046_v15 = vpack.c.bf16 %v4025_v11, %v4024_v7 }
 0x245   : > { %1412 = vst [vmem:[%s6028_s25 + $0x20] sm:$0xff] %v1349_v19  ;;  %v4079_v19 = vld [vmem:[%s5468_s10 + $0xb8] sm:$0xff] }
 0x246   : > { %5047 = vmatprep.subr.bf16.mxu0 %v5046_v15 }
 0x247   : > { %v4645_v21 = vpop.f32.mrb[22].mxu0  ;;  %5049 = vmatpush3.bf16.msra.mxu0 %v5046_v15 }
 0x248   : > { %1415 = vst [vmem:[%s6028_s25 + $0x38] sm:$0xff] %v4645_v21  ;;  %v1359_v27 = vpop.f32.mrb[23].mxu0  ;;  %5059 = vmatprep.subr.bf16.mxu0 %v5760_v6 }
 0x249   : > { %1414 = vst [vmem:[%s6028_s25 + $0x30] sm:$0xff] %v1359_v27 }
 0x24a   : > { %4859 = vmatmul.mubr.msk.f32.vlgmr.msra.gmra.mrb[48].mxu0 %vm334_vm0, %v5484_v36 }
 0x24b   : > { %v4648_v29 = vpop.f32.mrb[24].mxu0  ;;  %4861 = vmatprep.mubr.msk.f32.mxu0 %vm334_vm0, %v5494_v38  ;;  %5061 = vmatpush3.bf16.msra.mxu0 %v5760_v6  ;;  %v4078_v6 = vld [vmem:[%s5468_s10 + $0xb0] sm:$0xff] }
 0x24c   : > { %1417 = vst [vmem:[%s6028_s25 + $0x48] sm:$0xff] %v4648_v29  ;;  %v1369_v33 = vpop.f32.mrb[25].mxu0  ;;  %5063 = vmatprep.subr.bf16.mxu0 %v5770_v9  ;;  %v5050_v29 = vpack.c.bf16 %v4079_v19, %v4078_v6 }
 0x24d   : > { %1416 = vst [vmem:[%s6028_s25 + $0x40] sm:$0xff] %v1369_v33 }
 0x24e   : > { %4862 = vmatmul.mubr.msk.f32.gmra.mrb[50].mxu0 %vm334_vm0, %v5513_v41 }
 0x24f   : > { %v4651_v34 = vpop.f32.mrb[26].mxu0  ;;  %4864 = vmatprep.mubr.msk.f32.mxu0 %vm334_vm0, %v5524_v44 }
 0x250   : > { %1419 = vst [vmem:[%s6028_s25 + $0x58] sm:$0xff] %v4651_v34  ;;  %v1379_v23 = vpop.f32.mrb[27].mxu0 }
 0x251   : > { %1418 = vst [vmem:[%s6028_s25 + $0x50] sm:$0xff] %v1379_v23 }
 0x252   : > { %4865 = vmatmul.mubr.msk.f32.gmra.mrb[52].mxu0 %vm334_vm0, %v5542_v47 }
 0x253   : > { %v4654_v40 = vpop.f32.mrb[28].mxu0  ;;  %4867 = vmatprep.mubr.msk.f32.mxu0 %vm334_vm0, %v5552_v49 }
 0x254   : > { %1421 = vst [vmem:[%s6028_s25 + $0x68] sm:$0xff] %v4654_v40  ;;  %v1389_v45 = vpop.f32.mrb[29].mxu0 }
 0x255   : > { %1420 = vst [vmem:[%s6028_s25 + $0x60] sm:$0xff] %v1389_v45 }
 0x256   : > { %4868 = vmatmul.mubr.msk.f32.gmra.mrb[54].mxu0 %vm334_vm0, %v5570_v51 }
 0x257   : > { %v4657_v5 = vpop.f32.mrb[30].mxu0  ;;  %4870 = vmatprep.mubr.msk.f32.mxu0 %vm334_vm0, %v5580_v53 }
 0x258   : > { %1423 = vst [vmem:[%s6028_s25 + $0x78] sm:$0xff] %v4657_v5  ;;  %v1399_v14 = vpop.f32.mrb[31].mxu0 }
 0x259   : > { %1422 = vst [vmem:[%s6028_s25 + $0x70] sm:$0xff] %v1399_v14 }
 0x25a   : > { %4871 = vmatmul.mubr.msk.f32.gmra.mrb[56].mxu0 %vm334_vm0, %v5598_v55 }
 0x25b   : > { %4873 = vmatprep.mubr.msk.f32.mxu0 %vm334_vm0, %v5608_v57 }
 0x25e   : > { %4874 = vmatmul.mubr.msk.f32.gmra.mrb[58].mxu0 %vm334_vm0, %v5626_v59 }
 0x25f   : > { %4876 = vmatprep.mubr.msk.f32.mxu0 %vm334_vm0, %v5636_v61 }
 0x262   : > { %4877 = vmatmul.mubr.msk.f32.gmra.mrb[60].mxu0 %vm334_vm0, %v5654_v63 }
 0x263   : > { %4879 = vmatprep.mubr.msk.f32.mxu0 %vm334_vm0, %v5664_v1 }
 0x266   : > { %4880 = vmatmul.mubr.msk.f32.gmra.mrb[62].mxu0 %vm334_vm0, %v5682_v3 }
 0x27b   : > { %v4748_v21 = vpop.f32.mrb[32].mxu0 }
 0x27c   : > { %v2067_v27 = vpop.f32.mrb[33].mxu0 }
 0x27d   : > { %4774 = vmatprep.mubr.msk.f32.mxu1 %vm334_vm0, %v2067_v27 }
 0x27e   : > { %4775 = vmatmul.mubr.msk.f32.vlgmr.msra.gmra.mrb[48].mxu1 %vm334_vm0, %v4748_v21 }
 0x27f   : > { %v4751_v33 = vpop.f32.mrb[34].mxu0  ;;  %5041 = vmatpush3.bf16.msra.mxu1 %v5770_v9 }
 0x280   : > { %v2077_v34 = vpop.f32.mrb[35].mxu0  ;;  %5051 = vmatprep.subr.bf16.mxu1 %v5050_v29 }
 0x281   : > { %4777 = vmatprep.mubr.msk.f32.mxu1 %vm334_vm0, %v2077_v34  ;;  %v4077_v34 = vld [vmem:[%s5468_s10 + $0x58] sm:$0xff] }
 0x282   : > { %4778 = vmatmul.mubr.msk.f32.gmra.mrb[50].mxu1 %vm334_vm0, %v4751_v33  ;;  %v4076_v33 = vld [vmem:[%s5468_s10 + $0x50] sm:$0xff]  ;;  %s5213_s10 = smul.u32 6144, %s3759_s16  ;;  %s3679_s16 = scalar_lea.sflag [#allocation4], %s5451_s4 }
 0x283   : > { %v4754_v23 = vpop.f32.mrb[36].mxu0 }
 0x284   : > { %v2087_v40 = vpop.f32.mrb[37].mxu0  ;;  %s6347_s29 = scalar_lea.hbm %s6398_s3, %s5213_s10 }
 0x285   : > { %4780 = vmatprep.mubr.msk.f32.mxu1 %vm334_vm0, %v2087_v40 }
 0x286   : > { %4781 = vmatmul.mubr.msk.f32.gmra.mrb[52].mxu1 %vm334_vm0, %v4754_v23  ;;  %v5054_v23 = vpack.c.bf16 %v4077_v34, %v4076_v33 }
 0x287   : > { %v4757_v45 = vpop.f32.mrb[38].mxu0 }
 0x288   : > { %v2097_v5 = vpop.f32.mrb[39].mxu0 }
 0x289   : > { %4783 = vmatprep.mubr.msk.f32.mxu1 %vm334_vm0, %v2097_v5 }
 0x28a   : > { %4784 = vmatmul.mubr.msk.f32.gmra.mrb[54].mxu1 %vm334_vm0, %v4757_v45 }
 0x28b   : > { %v4760_v7 = vpop.f32.mrb[40].mxu0 }
 0x28c   : > { %v2107_v11 = vpop.f32.mrb[41].mxu0 }
 0x28d   : > { %4786 = vmatprep.mubr.msk.f32.mxu1 %vm334_vm0, %v2107_v11 }
 0x28e   : > { %4787 = vmatmul.mubr.msk.f32.gmra.mrb[56].mxu1 %vm334_vm0, %v4760_v7 }
 0x28f   : > { %v4763_v14 = vpop.f32.mrb[42].mxu0 }
 0x290   : > { %v2117_v15 = vpop.f32.mrb[43].mxu0 }
 0x291   : > { %4789 = vmatprep.mubr.msk.f32.mxu1 %vm334_vm0, %v2117_v15 }
 0x292   : > { %4790 = vmatmul.mubr.msk.f32.gmra.mrb[58].mxu1 %vm334_vm0, %v4763_v14 }
 0x293   : > { %v4766_v6 = vpop.f32.mrb[44].mxu0 }
 0x294   : > { %v2127_v19 = vpop.f32.mrb[45].mxu0 }
 0x295   : > { %4792 = vmatprep.mubr.msk.f32.mxu1 %vm334_vm0, %v2127_v19 }
 0x296   : > { %4793 = vmatmul.mubr.msk.f32.gmra.mrb[60].mxu1 %vm334_vm0, %v4766_v6 }
 0x297   : > { %v4769_v21 = vpop.f32.mrb[46].mxu0 }
 0x298   : > { %v2137_v27 = vpop.f32.mrb[47].mxu0 }
 0x299   : > { %4795 = vmatprep.mubr.msk.f32.mxu1 %vm334_vm0, %v2137_v27 }
 0x29a   : > { %4796 = vmatmul.mubr.msk.f32.gmra.mrb[62].mxu1 %vm334_vm0, %v4769_v21 }
 0x29b   : > { %4802 = vmatprep.mubr.msk.f32.mxu1 %vm334_vm0, %v5995_v18 }
 0x29e   : > { %4803 = vmatmul.mubr.msk.f32.vlgmr.msra.gmra.mrb[48].mxu1 %vm334_vm0, %v5993_v16 }
 0x29f   : > { %4805 = vmatprep.mubr.msk.f32.mxu1 %vm334_vm0, %v5999_v26  ;;  %5053 = vmatpush3.bf16.msra.mxu1 %v5050_v29 }
 0x2a0   : > { %5055 = vmatprep.subr.bf16.mxu1 %v5054_v23 }
 0x2a2   : > { %4806 = vmatmul.mubr.msk.f32.gmra.mrb[50].mxu1 %vm334_vm0, %v5997_v22 }
 0x2a3   : > { %4808 = vmatprep.mubr.msk.f32.mxu1 %vm334_vm0, %v6003_v32 }
 0x2a6   : > { %4809 = vmatmul.mubr.msk.f32.gmra.mrb[52].mxu1 %vm334_vm0, %v6001_v30 }
 0x2a7   : > { %4811 = vmatprep.mubr.msk.f32.mxu1 %vm334_vm0, %v6007_v4 }
 0x2aa   : > { %4812 = vmatmul.mubr.msk.f32.gmra.mrb[54].mxu1 %vm334_vm0, %v6005_v43 }
 0x2ab   : > { %4814 = vmatprep.mubr.msk.f32.mxu1 %vm334_vm0, %v6011_v12 }
 0x2ae   : > { %4815 = vmatmul.mubr.msk.f32.gmra.mrb[56].mxu1 %vm334_vm0, %v6009_v10 }
 0x2af   : > { %4817 = vmatprep.mubr.msk.f32.mxu1 %vm334_vm0, %v6015_v20 }
 0x2b2   : > { %4818 = vmatmul.mubr.msk.f32.gmra.mrb[58].mxu1 %vm334_vm0, %v6013_v17 }
 0x2b3   : > { %4820 = vmatprep.mubr.msk.f32.mxu1 %vm334_vm0, %v6019_v31 }
 0x2b6   : > { %4821 = vmatmul.mubr.msk.f32.gmra.mrb[60].mxu1 %vm334_vm0, %v6017_v28 }
 0x2b7   : > { %4823 = vmatprep.mubr.msk.f32.mxu1 %vm334_vm0, %v6023_v13 }
 0x2ba   : > { %4824 = vmatmul.mubr.msk.f32.gmra.mrb[62].mxu1 %vm334_vm0, %v6021_v8 }
 0x2bb   : > { %4886 = vmatprep.mubr.msk.f32.mxu1 %vm334_vm0, %v5456_v24 }
 0x2be   : > { %4887 = vmatmul.mubr.msk.f32.vlgmr.msra.gmra.mrb[64].mxu1 %vm334_vm0, %v5479_v35 }
 0x2bf   : > { %5057 = vmatpush3.bf16.msra.mxu1 %v5054_v23  ;;  %4889 = vmatprep.mubr.msk.f32.mxu1 %vm334_vm0, %v5489_v37 }
 0x2c2   : > { %4890 = vmatmul.mubr.msk.f32.gmra.mrb[66].mxu1 %vm334_vm0, %v5503_v39 }
 0x2c3   : > { %4892 = vmatprep.mubr.msk.f32.mxu1 %vm334_vm0, %v5518_v42 }
 0x2c6   : > { %4893 = vmatmul.mubr.msk.f32.gmra.mrb[68].mxu1 %vm334_vm0, %v5535_v46 }
 0x2c7   : > { %4895 = vmatprep.mubr.msk.f32.mxu1 %vm334_vm0, %v5547_v48 }
 0x2ca   : > { %4896 = vmatmul.mubr.msk.f32.gmra.mrb[70].mxu1 %vm334_vm0, %v5563_v50 }
 0x2cb   : > { %4898 = vmatprep.mubr.msk.f32.mxu1 %vm334_vm0, %v5575_v52 }
 0x2ce   : > { %4899 = vmatmul.mubr.msk.f32.gmra.mrb[72].mxu1 %vm334_vm0, %v5591_v54 }
 0x2cf   : > { %4901 = vmatprep.mubr.msk.f32.mxu1 %vm334_vm0, %v5603_v56 }
 0x2d2   : > { %4902 = vmatmul.mubr.msk.f32.gmra.mrb[74].mxu1 %vm334_vm0, %v5619_v58 }
 0x2d3   : > { %4904 = vmatprep.mubr.msk.f32.mxu1 %vm334_vm0, %v5631_v60 }
 0x2d6   : > { %4905 = vmatmul.mubr.msk.f32.gmra.mrb[76].mxu1 %vm334_vm0, %v5647_v62 }
 0x2d7   : > { %4907 = vmatprep.mubr.msk.f32.mxu1 %vm334_vm0, %v5659_v0 }
 0x2da   : > { %4908 = vmatmul.mubr.msk.f32.gmra.mrb[78].mxu1 %vm334_vm0, %v5675_v2 }
 0x2db   : > { %4914 = vmatprep.mubr.msk.f32.mxu1 %vm334_vm0, %v5461_v25 }
 0x2de   : > { %4915 = vmatmul.mubr.msk.f32.vlgmr.msra.gmra.mrb[64].mxu1 %vm334_vm0, %v5484_v36 }
 0x2df   : > { %4917 = vmatprep.mubr.msk.f32.mxu1 %vm334_vm0, %v5494_v38 }
 0x2e2   : > { %4918 = vmatmul.mubr.msk.f32.gmra.mrb[66].mxu1 %vm334_vm0, %v5513_v41 }
 0x2e3   : > { %4920 = vmatprep.mubr.msk.f32.mxu1 %vm334_vm0, %v5524_v44 }
 0x2e6   : > { %4921 = vmatmul.mubr.msk.f32.gmra.mrb[68].mxu1 %vm334_vm0, %v5542_v47 }
 0x2e7   : > { %4923 = vmatprep.mubr.msk.f32.mxu1 %vm334_vm0, %v5552_v49 }
 0x2ea   : > { %4924 = vmatmul.mubr.msk.f32.gmra.mrb[70].mxu1 %vm334_vm0, %v5570_v51 }
 0x2eb   : > { %4926 = vmatprep.mubr.msk.f32.mxu1 %vm334_vm0, %v5580_v53 }
 0x2ee   : > { %4927 = vmatmul.mubr.msk.f32.gmra.mrb[72].mxu1 %vm334_vm0, %v5598_v55 }
 0x2ef   : > { %4929 = vmatprep.mubr.msk.f32.mxu1 %vm334_vm0, %v5608_v57 }
 0x2f2   : > { %4930 = vmatmul.mubr.msk.f32.gmra.mrb[74].mxu1 %vm334_vm0, %v5626_v59 }
 0x2f3   : > { %4932 = vmatprep.mubr.msk.f32.mxu1 %vm334_vm0, %v5636_v61 }
 0x2f6   : > { %4933 = vmatmul.mubr.msk.f32.gmra.mrb[76].mxu1 %vm334_vm0, %v5654_v63 }
 0x2f7   : > { %4935 = vmatprep.mubr.msk.f32.mxu1 %vm334_vm0, %v5664_v1 }
 0x2fa   : > { %4936 = vmatmul.mubr.msk.f32.gmra.mrb[78].mxu1 %vm334_vm0, %v5682_v3 }
 0x31d   : > { %v6230_v24 = vpop.f32.mrb[48].mxu0 }
 0x31e   : > { %v6232_v25 = vpop.f32.mrb[49].mxu0 }
 0x321   : > { %v6234_v35 = vpop.f32.mrb[50].mxu0 }
 0x322   : > { %v6236_v36 = vpop.f32.mrb[51].mxu0 }
 0x325   : > { %v6238_v37 = vpop.f32.mrb[52].mxu0 }
 0x326   : > { %v6240_v38 = vpop.f32.mrb[53].mxu0 }
 0x329   : > { %v6242_v39 = vpop.f32.mrb[54].mxu0 }
 0x32a   : > { %v6244_v41 = vpop.f32.mrb[55].mxu0 }
 0x32d   : > { %v6246_v42 = vpop.f32.mrb[56].mxu0 }
 0x32e   : > { %v6248_v44 = vpop.f32.mrb[57].mxu0 }
 0x331   : > { %v6250_v46 = vpop.f32.mrb[58].mxu0 }
 0x332   : > { %v6252_v47 = vpop.f32.mrb[59].mxu0 }
 0x335   : > { %v6254_v48 = vpop.f32.mrb[60].mxu0 }
 0x336   : > { %v6256_v49 = vpop.f32.mrb[61].mxu0 }
 0x339   : > { %v6258_v50 = vpop.f32.mrb[62].mxu0 }
 0x33a   : > { %v6260_v51 = vpop.f32.mrb[63].mxu0 }
 0x371   : > { %v4804_v52 = vpop.f32.mrb[48].mxu1 }
 0x372   : > { %4009 = vst [vmem:[%s6028_s25 + $0x88] sm:$0xff] %v4804_v52  ;;  %v2455_v53 = vpop.f32.mrb[49].mxu1 }
 0x373   : > { %4008 = vst [vmem:[%s6028_s25 + $0x80] sm:$0xff] %v2455_v53 }
 0x375   : > { %v4807_v54 = vpop.f32.mrb[50].mxu1 }
 0x376   : > { %4011 = vst [vmem:[%s6028_s25 + $0x98] sm:$0xff] %v4807_v54  ;;  %v2465_v55 = vpop.f32.mrb[51].mxu1 }
 0x377   : > { %4010 = vst [vmem:[%s6028_s25 + $0x90] sm:$0xff] %v2465_v55 }
 0x379   : > { %v4810_v56 = vpop.f32.mrb[52].mxu1 }
 0x37a   : > { %4013 = vst [vmem:[%s6028_s25 + $0xa8] sm:$0xff] %v4810_v56  ;;  %v2475_v57 = vpop.f32.mrb[53].mxu1 }
 0x37b   : > { %4012 = vst [vmem:[%s6028_s25 + $0xa0] sm:$0xff] %v2475_v57 }
 0x37d   : > { %v4813_v58 = vpop.f32.mrb[54].mxu1 }
 0x37e   : > { %4015 = vst [vmem:[%s6028_s25 + $0xb8] sm:$0xff] %v4813_v58  ;;  %v2485_v59 = vpop.f32.mrb[55].mxu1 }
 0x37f   : > { %4014 = vst [vmem:[%s6028_s25 + $0xb0] sm:$0xff] %v2485_v59 }
 0x381   : > { %v4816_v60 = vpop.f32.mrb[56].mxu1 }
 0x382   : > { %4017 = vst [vmem:[%s6028_s25 + $0xc8] sm:$0xff] %v4816_v60  ;;  %v2495_v61 = vpop.f32.mrb[57].mxu1 }
 0x383   : > { %4016 = vst [vmem:[%s6028_s25 + $0xc0] sm:$0xff] %v2495_v61 }
 0x385   : > { %v4819_v62 = vpop.f32.mrb[58].mxu1 }
 0x386   : > { %4019 = vst [vmem:[%s6028_s25 + $0xd8] sm:$0xff] %v4819_v62  ;;  %v2505_v63 = vpop.f32.mrb[59].mxu1 }
 0x387   : > { %4018 = vst [vmem:[%s6028_s25 + $0xd0] sm:$0xff] %v2505_v63 }
 0x389   : > { %v4822_v0 = vpop.f32.mrb[60].mxu1 }
 0x38a   : > { %4021 = vst [vmem:[%s6028_s25 + $0xe8] sm:$0xff] %v4822_v0  ;;  %v2515_v1 = vpop.f32.mrb[61].mxu1 }
 0x38b   : > { %4020 = vst [vmem:[%s6028_s25 + $0xe0] sm:$0xff] %v2515_v1 }
 0x38d   : > { %v4825_v2 = vpop.f32.mrb[62].mxu1 }
 0x38e   : > { %4023 = vst [vmem:[%s6028_s25 + $0xf8] sm:$0xff] %v4825_v2  ;;  %v2525_v3 = vpop.f32.mrb[63].mxu1 }
 0x38f   : > { %4022 = vst [vmem:[%s6028_s25 + $0xf0] sm:$0xff] %v2525_v3 }
 0x3b1   : > { %v4916_v16 = vpop.f32.mrb[64].mxu1 }
 0x3b2   : > { %v3194_v18 = vpop.f32.mrb[65].mxu1 }
 0x3b3   : > { %4942 = vmatprep.mubr.msk.f32.mxu0 %vm334_vm0, %v3194_v18 }
 0x3b4   : > { %4943 = vmatmul.mubr.msk.f32.vlgmr.msra.gmra.mrb[64].mxu0 %vm334_vm0, %v4916_v16 }
 0x3b5   : > { %v4919_v22 = vpop.f32.mrb[66].mxu1  ;;  %5065 = vmatpush3.bf16.msra.mxu0 %v5770_v9 }
 0x3b6   : > { %v3204_v26 = vpop.f32.mrb[67].mxu1 }
 0x3b7   : > { %4945 = vmatprep.mubr.msk.f32.mxu0 %vm334_vm0, %v3204_v26 }
 0x3b8   : > { %4946 = vmatmul.mubr.msk.f32.gmra.mrb[66].mxu0 %vm334_vm0, %v4919_v22 }
 0x3b9   : > { %v4922_v30 = vpop.f32.mrb[68].mxu1 }
 0x3ba   : > { %v3214_v32 = vpop.f32.mrb[69].mxu1 }
 0x3bb   : > { %4948 = vmatprep.mubr.msk.f32.mxu0 %vm334_vm0, %v3214_v32 }
 0x3bc   : > { %4949 = vmatmul.mubr.msk.f32.gmra.mrb[68].mxu0 %vm334_vm0, %v4922_v30 }
 0x3bd   : > { %v4925_v43 = vpop.f32.mrb[70].mxu1 }
 0x3be   : > { %v3224_v4 = vpop.f32.mrb[71].mxu1 }
 0x3bf   : > { %4951 = vmatprep.mubr.msk.f32.mxu0 %vm334_vm0, %v3224_v4 }
 0x3c0   : > { %4952 = vmatmul.mubr.msk.f32.gmra.mrb[70].mxu0 %vm334_vm0, %v4925_v43 }
 0x3c1   : > { %v4928_v10 = vpop.f32.mrb[72].mxu1 }
 0x3c2   : > { %v3234_v12 = vpop.f32.mrb[73].mxu1 }
 0x3c3   : > { %4954 = vmatprep.mubr.msk.f32.mxu0 %vm334_vm0, %v3234_v12 }
 0x3c4   : > { %4955 = vmatmul.mubr.msk.f32.gmra.mrb[72].mxu0 %vm334_vm0, %v4928_v10 }
 0x3c5   : > { %v4931_v9 = vpop.f32.mrb[74].mxu1 }
 0x3c6   : > { %v3244_v17 = vpop.f32.mrb[75].mxu1 }
 0x3c7   : > { %4957 = vmatprep.mubr.msk.f32.mxu0 %vm334_vm0, %v3244_v17 }
 0x3c8   : > { %4958 = vmatmul.mubr.msk.f32.gmra.mrb[74].mxu0 %vm334_vm0, %v4931_v9 }
 0x3c9   : > { %v4934_v20 = vpop.f32.mrb[76].mxu1 }
 0x3ca   : > { %v3254_v28 = vpop.f32.mrb[77].mxu1 }
 0x3cb   : > { %4960 = vmatprep.mubr.msk.f32.mxu0 %vm334_vm0, %v3254_v28 }
 0x3cc   : > { %4961 = vmatmul.mubr.msk.f32.gmra.mrb[76].mxu0 %vm334_vm0, %v4934_v20 }
 0x3cd   : > { %v4937_v31 = vpop.f32.mrb[78].mxu1 }
 0x3ce   : > { %v3264_v8 = vpop.f32.mrb[79].mxu1 }
 0x3cf   : > { %4963 = vmatprep.mubr.msk.f32.mxu0 %vm334_vm0, %v3264_v8 }
 0x3d0   : > { %4964 = vmatmul.mubr.msk.f32.gmra.mrb[78].mxu0 %vm334_vm0, %v4937_v31 }
 0x3d1   : > { %4970 = vmatprep.mubr.msk.f32.mxu0 %vm334_vm0, %v6232_v25 }
 0x3d4   : > { %4971 = vmatmul.mubr.msk.f32.vlgmr.msra.gmra.mrb[64].mxu0 %vm334_vm0, %v6230_v24 }
 0x3d5   : > { %4973 = vmatprep.mubr.msk.f32.mxu0 %vm334_vm0, %v6236_v36 }
 0x3d8   : > { %4974 = vmatmul.mubr.msk.f32.gmra.mrb[66].mxu0 %vm334_vm0, %v6234_v35 }
 0x3d9   : > { %4976 = vmatprep.mubr.msk.f32.mxu0 %vm334_vm0, %v6240_v38 }
 0x3dc   : > { %4977 = vmatmul.mubr.msk.f32.gmra.mrb[68].mxu0 %vm334_vm0, %v6238_v37 }
 0x3dd   : > { %4979 = vmatprep.mubr.msk.f32.mxu0 %vm334_vm0, %v6244_v41 }
 0x3e0   : > { %4980 = vmatmul.mubr.msk.f32.gmra.mrb[70].mxu0 %vm334_vm0, %v6242_v39 }
 0x3e1   : > { %4982 = vmatprep.mubr.msk.f32.mxu0 %vm334_vm0, %v6248_v44 }
 0x3e4   : > { %4983 = vmatmul.mubr.msk.f32.gmra.mrb[72].mxu0 %vm334_vm0, %v6246_v42 }
 0x3e5   : > { %4985 = vmatprep.mubr.msk.f32.mxu0 %vm334_vm0, %v6252_v47 }
 0x3e8   : > { %4986 = vmatmul.mubr.msk.f32.gmra.mrb[74].mxu0 %vm334_vm0, %v6250_v46 }
 0x3e9   : > { %4988 = vmatprep.mubr.msk.f32.mxu0 %vm334_vm0, %v6256_v49 }
 0x3ec   : > { %4989 = vmatmul.mubr.msk.f32.gmra.mrb[76].mxu0 %vm334_vm0, %v6254_v48 }
 0x3ed   : > { %4991 = vmatprep.mubr.msk.f32.mxu0 %vm334_vm0, %v6260_v51 }
 0x3f0   : > { %4992 = vmatmul.mubr.msk.f32.gmra.mrb[78].mxu0 %vm334_vm0, %v6258_v50 }
 0x4a7   : > { %v4972_v13 = vpop.f32.mrb[64].mxu0 }
 0x4a8   : > { %4147 = vst [vmem:[%s6028_s25 + $0x108] sm:$0xff] %v4972_v13  ;;  %v3582_v29 = vpop.f32.mrb[65].mxu0 }
 0x4a9   : > { %4146 = vst [vmem:[%s6028_s25 + $0x100] sm:$0xff] %v3582_v29 }
 0x4ab   : > { %v4975_v40 = vpop.f32.mrb[66].mxu0 }
 0x4ac   : > { %4149 = vst [vmem:[%s6028_s25 + $0x118] sm:$0xff] %v4975_v40  ;;  %v3592_v45 = vpop.f32.mrb[67].mxu0 }
 0x4ad   : > { %4148 = vst [vmem:[%s6028_s25 + $0x110] sm:$0xff] %v3592_v45 }
 0x4af   : > { %v4978_v5 = vpop.f32.mrb[68].mxu0 }
 0x4b0   : > { %4151 = vst [vmem:[%s6028_s25 + $0x128] sm:$0xff] %v4978_v5  ;;  %v3602_v7 = vpop.f32.mrb[69].mxu0 }
 0x4b1   : > { %4150 = vst [vmem:[%s6028_s25 + $0x120] sm:$0xff] %v3602_v7 }
 0x4b3   : > { %v4981_v11 = vpop.f32.mrb[70].mxu0 }
 0x4b4   : > { %4153 = vst [vmem:[%s6028_s25 + $0x138] sm:$0xff] %v4981_v11  ;;  %v3612_v14 = vpop.f32.mrb[71].mxu0 }
 0x4b5   : > { %4152 = vst [vmem:[%s6028_s25 + $0x130] sm:$0xff] %v3612_v14 }
 0x4b7   : > { %v4984_v15 = vpop.f32.mrb[72].mxu0 }
 0x4b8   : > { %4155 = vst [vmem:[%s6028_s25 + $0x148] sm:$0xff] %v4984_v15  ;;  %v3622_v6 = vpop.f32.mrb[73].mxu0 }
 0x4b9   : > { %4154 = vst [vmem:[%s6028_s25 + $0x140] sm:$0xff] %v3622_v6 }
 0x4bb   : > { %v4987_v19 = vpop.f32.mrb[74].mxu0 }
 0x4bc   : > { %4157 = vst [vmem:[%s6028_s25 + $0x158] sm:$0xff] %v4987_v19  ;;  %v3632_v21 = vpop.f32.mrb[75].mxu0 }
 0x4bd   : > { %4156 = vst [vmem:[%s6028_s25 + $0x150] sm:$0xff] %v3632_v21 }
 0x4bf   : > { %v4990_v27 = vpop.f32.mrb[76].mxu0 }
 0x4c0   : > { %4159 = vst [vmem:[%s6028_s25 + $0x168] sm:$0xff] %v4990_v27  ;;  %v3642_v33 = vpop.f32.mrb[77].mxu0 }
 0x4c1   : > { %4158 = vst [vmem:[%s6028_s25 + $0x160] sm:$0xff] %v3642_v33 }
 0x4c3   : > { %v4993_v34 = vpop.f32.mrb[78].mxu0 }
 0x4c4   : > { %4161 = vst [vmem:[%s6028_s25 + $0x178] sm:$0xff] %v4993_v34  ;;  %v3652_v23 = vpop.f32.mrb[79].mxu0 }
 0x4c5   : > { %4160 = vst [vmem:[%s6028_s25 + $0x170] sm:$0xff] %v3652_v23 }
 0x4c6   : > { %5268 = shalt.err (!%p5265_p5)
}
 0x4c7   : > { %s5269_s8 = scalar_lea.hbm %s6347_s29, 6144  ;;  %s5273_s17 = scalar_lea.hbm %s6398_s3, 12288 }
 0x4c8   : > { %p5270_p7 = scmp.ne.s32.totalorder %s6347_s29, %s5269_s8  ;;  %p5274_p12 = scmp.lt.u32.totalorder %s6347_s29, %s6398_s3 }
 0x4c9   : > { %p5275_p13 = scmp.lt.u32.totalorder %s5273_s17, %s5269_s8  ;;  %p5277_p1 = scmp.lt.u32.totalorder %s5269_s8, %s6347_s29 }
 0x4ca   : > { %p5271_p10 = pnand %p5270_p7, %p5380_p6 }
 0x4cb   : > { %p5276_p0 = por %p5275_p13, %p5274_p12 }
 0x4cc   : > { %p5272_p11 = pneg %p5271_p10 }
 0x4cd   : > { %p5278_p2 = por %p5277_p1, %p5276_p0 }
 0x4cf   : > { %p5279_p3 = pnand %p5278_p2, %p5272_p11 }
 0x4d1   : > { %5282 = shalt.err (!%p5279_p3)
}
 0x4d2   : > { %s5320_s24 = smov 128   ;;  %s5321_s25 = smov 8  }
 0x4d3   : > { %5214 = dma.vmem_to_hbm [thread:$0]  (%p5380_p6), %s6349_s26, 6144, %s6347_s29, %s3679_s16, %s5320_s24, %s5320_s24, %s5321_s25  }
 0x4d4 PF: > { %s3707_s10 = sand.u32 1, %s5305_s12   ;;  %p5217_p4 = pnand %p3762_p9, %p5384_p8 }
 0x4d5   : > { %s3708_s27 = scalar_lea.sflag [#allocation4], %s3707_s10 }
 0x4d6   : > { %5300 = dma.done.wait (!%p5217_p4), %s3708_s27, 6144  }
 0x4d7   : > { %5302 = vsyncadd (!%p5217_p4), %s3708_s27, 4294961152  ;;  %p13_p5 = scmp.ge.s32.totalorder %s5365_s18, 4   ;;  %s6401_s12 = smov %s5309_s13 }
 0x4d8   : > { %s6402_s13 = smov %s5313_s14  ;;  %s6403_s14 = smov %s5378_s21 }
 0x4d9   : > { %s6404_s15 = smov %s5365_s18  ;;  %15 = sbr.rel (!%p13_p5) target bundleno = 3 (0x3), region = 125 }
 0x4e0   :  { %3713 = vsyncpa [#allocation4], 1 }
 0x4e1   :  { %3715 = vsyncpa [#allocation4 + $0x1], 1 }

</bundles_post_ra>
